<compile_context>
chip_gen: v7x
topology: tpu7x:2x2x1
jax: 0.10.0
libtpu: 0.0.40
codegen_flags: <defaults>
</compile_context>

<pallas_src>
import math

import jax
import jax.numpy as jnp
from jax.experimental import pallas as pl
from jax.experimental.pallas import tpu as pltpu

# ----------------------- small synthetic CLIP-ViT config ---------------------
B = 2                 # batch
C = 3                 # image channels (CLIP visual conv1 expects 3)
IMG = 16              # spatial size
PATCH = 8             # patch size  -> grid 2x2
GRID = IMG // PATCH
NPATCH = GRID * GRID  # 4
SEQ = NPATCH + 1      # 5  (+1 class token)
S_PAD = 8             # padded per-batch sequence (sublane aligned)
ROWS = B * S_PAD      # 16
WIDTH = 32            # transformer width
HEADS = 4
HEAD_DIM = WIDTH // HEADS
MLP = 4 * WIDTH       # 128 (lane-dense)
LAYERS = 2
OUT_DIM = 16          # CLIP visual projection dim == probe intermediate_size
NUM_CLASSES = 1
EPS = 1e-5
PATCH_DIM = C * PATCH * PATCH   # 192
SCALE = 1.0 / math.sqrt(HEAD_DIM)

OUT_LANES = 128       # lane-dense padded output block width
GLOB_BIAS_ROW = 8     # attn bias rows inside the global slab
GLOB_BASE_ROW = 24    # cls+pos token-base rows inside the global slab
GLOB_ROWS = 40


# ------------------------------- kernel helpers -------------------------------
def _mm_t(a, w):
    """a[m,k] @ w[n,k]^T  (torch.nn.Linear convention) without transposes."""
    return jax.lax.dot_general(a, w, (((1,), (1,)), ((), ())),
                               preferred_element_type=jnp.float32)


def _ln(x, g, b):
    mu = jnp.mean(x, axis=-1, keepdims=True)
    var = jnp.mean(jnp.square(x - mu), axis=-1, keepdims=True)
    return (x - mu) * jax.lax.rsqrt(var + EPS) * g + b


# ------------------------------ fused Pallas kernel ---------------------------
def fused_clip_probe_kernel(patches_ref, convw_ref, glob_ref, lsmall_ref,
                            qkvw_ref, wo_ref, w1_ref, w2_ref, headw_ref,
                            out_ref, ctx_ref):
    # ---- unpack the global small-parameter slab (single DMA'd [40,128]) ----
    g = glob_ref[...]
    ln_pre_g = g[0:1, :WIDTH]
    ln_pre_b = g[1:2, :WIDTH]
    ln_post_g = g[2:3, :WIDTH]
    ln_post_b = g[3:4, :WIDTH]
    head_b = g[4:5, :]                                            # [1, 128]
    attn_bias = g[GLOB_BIAS_ROW:GLOB_BIAS_ROW + ROWS, :ROWS]      # [ROWS, ROWS]
    tok_base = g[GLOB_BASE_ROW:GLOB_BASE_ROW + ROWS, :WIDTH]      # [ROWS, WIDTH]

    # ---- patch embedding (conv-as-matmul) + cls/pos base, ln_pre ----
    x = _mm_t(patches_ref[...], convw_ref[...]) + tok_base        # [ROWS, WIDTH]
    x = _ln(x, ln_pre_g, ln_pre_b)

    for l in range(LAYERS):                       # static unroll (toy size)
        ls = lsmall_ref[l]                        # [8, 128] per-layer slab
        ln1_g = ls[0:1, :WIDTH]
        ln1_b = ls[1:2, :WIDTH]
        qkv_b = ls[2:3, :3 * WIDTH]               # Q part pre-scaled
        bo = ls[3:4, :WIDTH]
        ln2_g = ls[4:5, :WIDTH]
        ln2_b = ls[5:6, :WIDTH]
        b1 = ls[6:7, :MLP]
        b2 = ls[7:8, :WIDTH]

        # ---- attention: ONE fused QKV matmul, ctx assembled in VMEM scratch
        h = _ln(x, ln1_g, ln1_b)
        qkv = _mm_t(h, qkvw_ref[l]) + qkv_b                       # [ROWS, 3W]
        for hd in range(HEADS):                   # static unroll over heads
            lo = hd * HEAD_DIM
            hi = lo + HEAD_DIM
            q_h = qkv[:, lo:hi]                                   # pre-scaled
            k_h = qkv[:, WIDTH + lo:WIDTH + hi]
            v_h = qkv[:, 2 * WIDTH + lo:2 * WIDTH + hi]
            sc = _mm_t(q_h, k_h) + attn_bias                      # [ROWS, ROWS]
            sc = sc - jnp.max(sc, axis=-1, keepdims=True)
            e = jnp.exp(sc)
            p = e * pl.reciprocal(jnp.sum(e, axis=-1, keepdims=True),
                                  approx=True)
            ctx_ref[:, lo:hi] = jnp.dot(p, v_h,
                                        preferred_element_type=jnp.float32)
        x = x + _mm_t(ctx_ref[...], wo_ref[l]) + bo               # ONE Wo matmul

        # ---- MLP with QuickGELU (kept in f32) ----
        h2 = _ln(x, ln2_g, ln2_b)
        m = _mm_t(h2, w1_ref[l]) + b1                             # [ROWS, MLP]
        m = m * jax.nn.sigmoid(1.702 * m)                         # CLIP QuickGELU
        x = x + _mm_t(m, w2_ref[l]) + b2

    # ---- ln_post over ALL rows (no row gather) + fused (proj ; fc∘proj) head
    # head_w rows 0:OUT_DIM = proj, row OUT_DIM = fc_w @ proj, rest zero ->
    # single [ROWS, 128] lane-dense unmasked store.
    xp = _ln(x, ln_post_g, ln_post_b)
    out_ref[...] = _mm_t(xp, headw_ref[...]) + head_b


# ----------------------------- parameter init ---------------------------------
def init_params(key):
    keys = iter(jax.random.split(key, 32))

    def rnd(shape, s=0.02):
        return s * jax.random.normal(next(keys), shape, jnp.float32)

    scale = WIDTH ** -0.5
    p = {
        'conv_w': rnd((WIDTH, C, PATCH, PATCH)),                     # conv1, no bias
        'cls': scale * jax.random.normal(next(keys), (WIDTH,), jnp.float32),
        'pos': scale * jax.random.normal(next(keys), (SEQ, WIDTH), jnp.float32),
        'ln_pre_g': jnp.ones((1, WIDTH), jnp.float32),
        'ln_pre_b': jnp.zeros((1, WIDTH), jnp.float32),
        'ln_post_g': jnp.ones((1, WIDTH), jnp.float32),
        'ln_post_b': jnp.zeros((1, WIDTH), jnp.float32),
        'proj': scale * jax.random.normal(next(keys), (OUT_DIM, WIDTH), jnp.float32),
        'fc_w': rnd((NUM_CLASSES, OUT_DIM), 0.1),                    # probe head Linear
        'fc_b': rnd((1, NUM_CLASSES), 0.01),
        # per-layer transformer weights (canonical / reference layout)
        'ln1_g': jnp.ones((LAYERS, 1, WIDTH), jnp.float32),
        'ln1_b': jnp.zeros((LAYERS, 1, WIDTH), jnp.float32),
        'wqh': rnd((LAYERS, HEADS, HEAD_DIM, WIDTH)),
        'bqh': rnd((LAYERS, HEADS, 1, HEAD_DIM), 0.01),
        'wkh': rnd((LAYERS, HEADS, HEAD_DIM, WIDTH)),
        'bkh': rnd((LAYERS, HEADS, 1, HEAD_DIM), 0.01),
        'wvh': rnd((LAYERS, HEADS, HEAD_DIM, WIDTH)),
        'bvh': rnd((LAYERS, HEADS, 1, HEAD_DIM), 0.01),
        'wo': rnd((LAYERS, WIDTH, WIDTH)),
        'bo': rnd((LAYERS, 1, WIDTH), 0.01),
        'ln2_g': jnp.ones((LAYERS, 1, WIDTH), jnp.float32),
        'ln2_b': jnp.zeros((LAYERS, 1, WIDTH), jnp.float32),
        'w1': rnd((LAYERS, MLP, WIDTH)),
        'b1': rnd((LAYERS, 1, MLP), 0.01),
        'w2': rnd((LAYERS, WIDTH, MLP)),
        'b2': rnd((LAYERS, 1, WIDTH), 0.01),
    }
    return p


def pack_params(p):
    """Build the packed kernel slabs ONCE (outside the jitted forward)."""
    # Fused QKV weights [L, 3W, W] with 1/sqrt(HEAD_DIM) folded into Q.
    wq = p['wqh'].reshape(LAYERS, WIDTH, WIDTH) * SCALE
    wk = p['wkh'].reshape(LAYERS, WIDTH, WIDTH)
    wv = p['wvh'].reshape(LAYERS, WIDTH, WIDTH)
    qkv_w = jnp.concatenate([wq, wk, wv], axis=1)                 # [L, 3W, W]
    bq = p['bqh'].reshape(LAYERS, WIDTH) * SCALE
    bk = p['bkh'].reshape(LAYERS, WIDTH)
    bv = p['bvh'].reshape(LAYERS, WIDTH)
    qkv_b = jnp.concatenate([bq, bk, bv], axis=1)                 # [L, 3W]

    # Per-layer small-parameter slab [L, 8, 128]
    ls = jnp.zeros((LAYERS, 8, 128), jnp.float32)
    ls = ls.at[:, 0, :WIDTH].set(p['ln1_g'][:, 0, :])
    ls = ls.at[:, 1, :WIDTH].set(p['ln1_b'][:, 0, :])
    ls = ls.at[:, 2, :3 * WIDTH].set(qkv_b)
    ls = ls.at[:, 3, :WIDTH].set(p['bo'][:, 0, :])
    ls = ls.at[:, 4, :WIDTH].set(p['ln2_g'][:, 0, :])
    ls = ls.at[:, 5, :WIDTH].set(p['ln2_b'][:, 0, :])
    ls = ls.at[:, 6, :MLP].set(p['b1'][:, 0, :])
    ls = ls.at[:, 7, :WIDTH].set(p['b2'][:, 0, :])

    # cls + positional embedding base on the padded [ROWS, WIDTH] token grid
    base = jnp.pad(p['pos'], ((0, S_PAD - SEQ), (0, 0)))
    base = base.at[0, :].add(p['cls'])
    tok_base = jnp.tile(base, (B, 1))                             # [ROWS, WIDTH]

    # additive attention bias: block-diagonal per batch, -1e30 on padded keys
    row_batch = jnp.arange(ROWS) // S_PAD
    col_valid = (jnp.arange(ROWS) % S_PAD) < SEQ
    ok = (row_batch[:, None] == row_batch[None, :]) & col_valid[None, :]
    attn_bias = jnp.where(ok, 0.0, -1e30).astype(jnp.float32)     # [ROWS, ROWS]

    # Global small-parameter slab [40, 128]
    glob = jnp.zeros((GLOB_ROWS, 128), jnp.float32)
    glob = glob.at[0, :WIDTH].set(p['ln_pre_g'][0])
    glob = glob.at[1, :WIDTH].set(p['ln_pre_b'][0])
    glob = glob.at[2, :WIDTH].set(p['ln_post_g'][0])
    glob = glob.at[3, :WIDTH].set(p['ln_post_b'][0])
    glob = glob.at[4, OUT_DIM:OUT_DIM + NUM_CLASSES].set(p['fc_b'][0])
    glob = glob.at[GLOB_BIAS_ROW:GLOB_BIAS_ROW + ROWS, :ROWS].set(attn_bias)
    glob = glob.at[GLOB_BASE_ROW:GLOB_BASE_ROW + ROWS, :WIDTH].set(tok_base)

    # Fused output head [128, WIDTH]: feats rows (proj), logit row (fc_w@proj)
    head_w = jnp.zeros((OUT_LANES, WIDTH), jnp.float32)
    head_w = head_w.at[:OUT_DIM, :].set(p['proj'])
    head_w = head_w.at[OUT_DIM:OUT_DIM + NUM_CLASSES, :].set(p['fc_w'] @ p['proj'])

    return {
        'convw': p['conv_w'].reshape(WIDTH, PATCH_DIM),
        'glob': glob,
        'lsmall': ls,
        'qkv_w': qkv_w,
        'wo': p['wo'],
        'w1': p['w1'],
        'w2': p['w2'],
        'head_w': head_w,
    }


# ------------------------------ forward (Pallas) -------------------------------
def clip_probe_forward(x_nchw, kern):
    b = x_nchw.shape[0]
    # NCHW -> non-overlapping patch rows, padded to S_PAD rows per batch image
    patches = x_nchw.reshape(b, C, GRID, PATCH, GRID, PATCH)
    patches = patches.transpose(0, 2, 4, 1, 3, 5).reshape(b, NPATCH, PATCH_DIM)
    patches_pad = jnp.pad(patches, ((0, 0), (1, S_PAD - SEQ), (0, 0)))
    patches_pad = patches_pad.reshape(b * S_PAD, PATCH_DIM)        # [ROWS, 192]

    args = (patches_pad, kern['convw'], kern['glob'], kern['lsmall'],
            kern['qkv_w'], kern['wo'], kern['w1'], kern['w2'], kern['head_w'])

    out = pl.pallas_call(
        fused_clip_probe_kernel,
        out_shape=jax.ShapeDtypeStruct((ROWS, OUT_LANES), jnp.float32),
        in_specs=[pl.BlockSpec(memory_space=pltpu.MemorySpace.VMEM)] * len(args),
        out_specs=pl.BlockSpec(memory_space=pltpu.MemorySpace.VMEM),
        scratch_shapes=[pltpu.VMEM((ROWS, WIDTH), jnp.float32)],   # ctx scratch
    )(*args)

    cls_rows = jnp.arange(b) * S_PAD          # class-token row per batch image
    feats = out[cls_rows, :OUT_DIM]
    logits = out[cls_rows, OUT_DIM:OUT_DIM + NUM_CLASSES]
    return logits, feats


# ----------------------------- pure-JAX reference ------------------------------
def _ln_ref(v, g, b):
    mu = jnp.mean(v, axis=-1, keepdims=True)
    var = jnp.mean(jnp.square(v - mu), axis=-1, keepdims=True)
    return (v - mu) * jax.lax.rsqrt(var + EPS) * g + b


def reference_forward(x_nchw, p):
    b = x_nchw.shape[0]
    patches = x_nchw.reshape(b, C, GRID, PATCH, GRID, PATCH)
    patches = patches.transpose(0, 2, 4, 1, 3, 5).reshape(b, NPATCH, PATCH_DIM)
    emb = patches @ p['conv_w'].reshape(WIDTH, -1).T
    cls = jnp.broadcast_to(p['cls'][None, None, :], (b, 1, WIDTH))
    x = jnp.concatenate([cls, emb], axis=1) + p['pos'][None]
    x = _ln_ref(x, p['ln_pre_g'][0], p['ln_pre_b'][0])
    for l in range(LAYERS):
        wq = p['wqh'][l].reshape(WIDTH, WIDTH); bq = p['bqh'][l].reshape(WIDTH)
        wk = p['wkh'][l].reshape(WIDTH, WIDTH); bk = p['bkh'][l].reshape(WIDTH)
        wv = p['wvh'][l].reshape(WIDTH, WIDTH); bv = p['bvh'][l].reshape(WIDTH)
        h = _ln_ref(x, p['ln1_g'][l, 0], p['ln1_b'][l, 0])
        q = h @ wq.T + bq
        k = h @ wk.T + bk
        v = h @ wv.T + bv
        q = q.reshape(b, SEQ, HEADS, HEAD_DIM).transpose(0, 2, 1, 3) / math.sqrt(HEAD_DIM)
        k = k.reshape(b, SEQ, HEADS, HEAD_DIM).transpose(0, 2, 1, 3)
        v = v.reshape(b, SEQ, HEADS, HEAD_DIM).transpose(0, 2, 1, 3)
        att = jax.nn.softmax(q @ k.transpose(0, 1, 3, 2), axis=-1)
        ctx = (att @ v).transpose(0, 2, 1, 3).reshape(b, SEQ, WIDTH)
        x = x + ctx @ p['wo'][l].T + p['bo'][l, 0]
        h2 = _ln_ref(x, p['ln2_g'][l, 0], p['ln2_b'][l, 0])
        m = h2 @ p['w1'][l].T + p['b1'][l, 0]
        m = m * jax.nn.sigmoid(1.702 * m)
        x = x + m @ p['w2'][l].T + p['b2'][l, 0]
    cls_tok = _ln_ref(x[:, 0, :], p['ln_post_g'][0], p['ln_post_b'][0])
    feats = cls_tok @ p['proj'].T
    logits = feats @ p['fc_w'].T + p['fc_b'][0]
    return logits, feats


# ------------------------------------ main -------------------------------------
if __name__ == "__main__":
    key = jax.random.PRNGKey(0)
    kx, kp = jax.random.split(key)
    x = jax.random.normal(kx, (B, C, IMG, IMG), jnp.float32)
    params = init_params(kp)
    kern = pack_params(params)            # parameter packing done once, up front

    logits, feats = jax.jit(clip_probe_forward)(x, kern)
    jax.block_until_ready(logits)

    ref_logits, ref_feats = reference_forward(x, params)
    assert logits.shape == (B, NUM_CLASSES) and feats.shape == (B, OUT_DIM)
    assert jnp.allclose(feats, ref_feats, atol=2e-3, rtol=2e-3)
    assert jnp.allclose(logits, ref_logits, atol=2e-3, rtol=2e-3)
    print("KERNEL_OK")
</pallas_src>

<mosaic_0001>
module attributes {stable_mosaic.version = 11 : i64} {
  func.func @fused_clip_probe_kernel(%arg0: memref<16x192xf32, #tpu.memory_space<vmem>>, %arg1: memref<32x192xf32, #tpu.memory_space<vmem>>, %arg2: memref<40x128xf32, #tpu.memory_space<vmem>>, %arg3: memref<2x8x128xf32, #tpu.memory_space<vmem>>, %arg4: memref<2x96x32xf32, #tpu.memory_space<vmem>>, %arg5: memref<2x32x32xf32, #tpu.memory_space<vmem>>, %arg6: memref<2x128x32xf32, #tpu.memory_space<vmem>>, %arg7: memref<2x32x128xf32, #tpu.memory_space<vmem>>, %arg8: memref<128x32xf32, #tpu.memory_space<vmem>>, %arg9: memref<16x128xf32, #tpu.memory_space<vmem>>, %arg10: memref<16x32xf32, #tpu.memory_space<vmem>>) attributes {dimension_semantics = [], scalar_prefetch = 0 : i64, scratch_operands = 1 : i64, tpu.core_type = #tpu.core_type<tc>} {
    %c0 = arith.constant 0 : index
    %c0_0 = arith.constant 0 : index
    %0 = vector.load %arg2[%c0, %c0_0] : memref<40x128xf32, #tpu.memory_space<vmem>>, vector<40x128xf32>
    %1 = vector.extract_strided_slice %0 {offsets = [0, 0], sizes = [1, 32], strides = [1, 1]} : vector<40x128xf32> to vector<1x32xf32>
    %2 = vector.extract_strided_slice %0 {offsets = [1, 0], sizes = [1, 32], strides = [1, 1]} : vector<40x128xf32> to vector<1x32xf32>
    %3 = vector.extract_strided_slice %0 {offsets = [2, 0], sizes = [1, 32], strides = [1, 1]} : vector<40x128xf32> to vector<1x32xf32>
    %4 = vector.extract_strided_slice %0 {offsets = [3, 0], sizes = [1, 32], strides = [1, 1]} : vector<40x128xf32> to vector<1x32xf32>
    %5 = vector.extract_strided_slice %0 {offsets = [4, 0], sizes = [1, 128], strides = [1, 1]} : vector<40x128xf32> to vector<1x128xf32>
    %6 = vector.extract_strided_slice %0 {offsets = [8, 0], sizes = [16, 16], strides = [1, 1]} : vector<40x128xf32> to vector<16x16xf32>
    %7 = vector.extract_strided_slice %0 {offsets = [24, 0], sizes = [16, 32], strides = [1, 1]} : vector<40x128xf32> to vector<16x32xf32>
    %c0_1 = arith.constant 0 : index
    %c0_2 = arith.constant 0 : index
    %8 = vector.load %arg0[%c0_1, %c0_2] : memref<16x192xf32, #tpu.memory_space<vmem>>, vector<16x192xf32>
    %c0_3 = arith.constant 0 : index
    %c0_4 = arith.constant 0 : index
    %9 = vector.load %arg1[%c0_3, %c0_4] : memref<32x192xf32, #tpu.memory_space<vmem>>, vector<32x192xf32>
    %cst = arith.constant dense<0.000000e+00> : vector<16x32xf32>
    %10 = tpu.matmul %8, %9, %cst {dimension_numbers = #tpu.dot_dimension_numbers<[1], [1], [0], [0], [0, 0, 1, 0], [], []>} : vector<16x192xf32>, vector<32x192xf32>, vector<16x32xf32> -> vector<16x32xf32>
    %11 = arith.addf %10, %7 : vector<16x32xf32>
    %cst_5 = arith.constant dense<0.000000e+00> : vector<16xf32>
    %12 = vector.multi_reduction <add>, %11, %cst_5 [1] : vector<16x32xf32> to vector<16xf32>
    %13 = vector.shape_cast %12 : vector<16xf32> to vector<16x1xf32>
    %cst_6 = arith.constant 3.200000e+01 : f32
    %14 = vector.broadcast %cst_6 : f32 to vector<16x1xf32>
    %15 = arith.divf %13, %14 : vector<16x1xf32>
    %16 = vector.broadcast %15 : vector<16x1xf32> to vector<16x32xf32>
    %17 = arith.subf %11, %16 : vector<16x32xf32>
    %18 = arith.mulf %17, %17 : vector<16x32xf32>
    %cst_7 = arith.constant dense<0.000000e+00> : vector<16xf32>
    %19 = vector.multi_reduction <add>, %18, %cst_7 [1] : vector<16x32xf32> to vector<16xf32>
    %20 = vector.shape_cast %19 : vector<16xf32> to vector<16x1xf32>
    %cst_8 = arith.constant 3.200000e+01 : f32
    %21 = vector.broadcast %cst_8 : f32 to vector<16x1xf32>
    %22 = arith.divf %20, %21 : vector<16x1xf32>
    %23 = vector.broadcast %15 : vector<16x1xf32> to vector<16x32xf32>
    %24 = arith.subf %11, %23 : vector<16x32xf32>
    %cst_9 = arith.constant 9.99999974E-6 : f32
    %25 = vector.broadcast %cst_9 : f32 to vector<16x1xf32>
    %26 = arith.addf %22, %25 : vector<16x1xf32>
    %27 = math.rsqrt %26 : vector<16x1xf32>
    %28 = vector.broadcast %27 : vector<16x1xf32> to vector<16x32xf32>
    %29 = arith.mulf %24, %28 : vector<16x32xf32>
    %30 = vector.broadcast %1 : vector<1x32xf32> to vector<16x32xf32>
    %31 = arith.mulf %29, %30 : vector<16x32xf32>
    %32 = vector.broadcast %2 : vector<1x32xf32> to vector<16x32xf32>
    %33 = arith.addf %31, %32 : vector<16x32xf32>
    %c0_10 = arith.constant 0 : index
    %c0_11 = arith.constant 0 : index
    %c0_12 = arith.constant 0 : index
    %34 = vector.load %arg3[%c0_10, %c0_11, %c0_12] : memref<2x8x128xf32, #tpu.memory_space<vmem>>, vector<1x8x128xf32>
    %35 = vector.shape_cast %34 : vector<1x8x128xf32> to vector<8x128xf32>
    %36 = vector.extract_strided_slice %35 {offsets = [0, 0], sizes = [1, 32], strides = [1, 1]} : vector<8x128xf32> to vector<1x32xf32>
    %37 = vector.extract_strided_slice %35 {offsets = [1, 0], sizes = [1, 32], strides = [1, 1]} : vector<8x128xf32> to vector<1x32xf32>
    %38 = vector.extract_strided_slice %35 {offsets = [2, 0], sizes = [1, 96], strides = [1, 1]} : vector<8x128xf32> to vector<1x96xf32>
    %39 = vector.extract_strided_slice %35 {offsets = [3, 0], sizes = [1, 32], strides = [1, 1]} : vector<8x128xf32> to vector<1x32xf32>
    %40 = vector.extract_strided_slice %35 {offsets = [4, 0], sizes = [1, 32], strides = [1, 1]} : vector<8x128xf32> to vector<1x32xf32>
    %41 = vector.extract_strided_slice %35 {offsets = [5, 0], sizes = [1, 32], strides = [1, 1]} : vector<8x128xf32> to vector<1x32xf32>
    %42 = vector.extract_strided_slice %35 {offsets = [6, 0], sizes = [1, 128], strides = [1, 1]} : vector<8x128xf32> to vector<1x128xf32>
    %43 = vector.extract_strided_slice %35 {offsets = [7, 0], sizes = [1, 32], strides = [1, 1]} : vector<8x128xf32> to vector<1x32xf32>
    %cst_13 = arith.constant dense<0.000000e+00> : vector<16xf32>
    %44 = vector.multi_reduction <add>, %33, %cst_13 [1] : vector<16x32xf32> to vector<16xf32>
    %45 = vector.shape_cast %44 : vector<16xf32> to vector<16x1xf32>
    %cst_14 = arith.constant 3.200000e+01 : f32
    %46 = vector.broadcast %cst_14 : f32 to vector<16x1xf32>
    %47 = arith.divf %45, %46 : vector<16x1xf32>
    %48 = vector.broadcast %47 : vector<16x1xf32> to vector<16x32xf32>
    %49 = arith.subf %33, %48 : vector<16x32xf32>
    %50 = arith.mulf %49, %49 : vector<16x32xf32>
    %cst_15 = arith.constant dense<0.000000e+00> : vector<16xf32>
    %51 = vector.multi_reduction <add>, %50, %cst_15 [1] : vector<16x32xf32> to vector<16xf32>
    %52 = vector.shape_cast %51 : vector<16xf32> to vector<16x1xf32>
    %cst_16 = arith.constant 3.200000e+01 : f32
    %53 = vector.broadcast %cst_16 : f32 to vector<16x1xf32>
    %54 = arith.divf %52, %53 : vector<16x1xf32>
    %55 = vector.broadcast %47 : vector<16x1xf32> to vector<16x32xf32>
    %56 = arith.subf %33, %55 : vector<16x32xf32>
    %cst_17 = arith.constant 9.99999974E-6 : f32
    %57 = vector.broadcast %cst_17 : f32 to vector<16x1xf32>
    %58 = arith.addf %54, %57 : vector<16x1xf32>
    %59 = math.rsqrt %58 : vector<16x1xf32>
    %60 = vector.broadcast %59 : vector<16x1xf32> to vector<16x32xf32>
    %61 = arith.mulf %56, %60 : vector<16x32xf32>
    %62 = vector.broadcast %36 : vector<1x32xf32> to vector<16x32xf32>
    %63 = arith.mulf %61, %62 : vector<16x32xf32>
    %64 = vector.broadcast %37 : vector<1x32xf32> to vector<16x32xf32>
    %65 = arith.addf %63, %64 : vector<16x32xf32>
    %c0_18 = arith.constant 0 : index
    %c0_19 = arith.constant 0 : index
    %c0_20 = arith.constant 0 : index
    %66 = vector.load %arg4[%c0_18, %c0_19, %c0_20] : memref<2x96x32xf32, #tpu.memory_space<vmem>>, vector<1x96x32xf32>
    %67 = vector.shape_cast %66 : vector<1x96x32xf32> to vector<96x32xf32>
    %cst_21 = arith.constant dense<0.000000e+00> : vector<16x96xf32>
    %68 = tpu.matmul %65, %67, %cst_21 {dimension_numbers = #tpu.dot_dimension_numbers<[1], [1], [0], [0], [0, 0, 1, 0], [], []>} : vector<16x32xf32>, vector<96x32xf32>, vector<16x96xf32> -> vector<16x96xf32>
    %69 = vector.broadcast %38 : vector<1x96xf32> to vector<16x96xf32>
    %70 = arith.addf %68, %69 : vector<16x96xf32>
    %71 = vector.extract_strided_slice %70 {offsets = [0, 0], sizes = [16, 8], strides = [1, 1]} : vector<16x96xf32> to vector<16x8xf32>
    %72 = vector.extract_strided_slice %70 {offsets = [0, 32], sizes = [16, 8], strides = [1, 1]} : vector<16x96xf32> to vector<16x8xf32>
    %73 = vector.extract_strided_slice %70 {offsets = [0, 64], sizes = [16, 8], strides = [1, 1]} : vector<16x96xf32> to vector<16x8xf32>
    %cst_22 = arith.constant dense<0.000000e+00> : vector<16x16xf32>
    %74 = tpu.matmul %71, %72, %cst_22 {dimension_numbers = #tpu.dot_dimension_numbers<[1], [1], [0], [0], [0, 0, 1, 0], [], []>} : vector<16x8xf32>, vector<16x8xf32>, vector<16x16xf32> -> vector<16x16xf32>
    %75 = arith.addf %74, %6 : vector<16x16xf32>
    %cst_23 = arith.constant dense<0xFF800000> : vector<16xf32>
    %76 = vector.multi_reduction <maximumf>, %75, %cst_23 [1] : vector<16x16xf32> to vector<16xf32>
    %77 = vector.shape_cast %76 : vector<16xf32> to vector<16x1xf32>
    %78 = vector.broadcast %77 : vector<16x1xf32> to vector<16x16xf32>
    %79 = arith.subf %75, %78 : vector<16x16xf32>
    %80 = math.exp %79 : vector<16x16xf32>
    %cst_24 = arith.constant dense<0.000000e+00> : vector<16xf32>
    %81 = vector.multi_reduction <add>, %80, %cst_24 [1] : vector<16x16xf32> to vector<16xf32>
    %82 = vector.shape_cast %81 : vector<16xf32> to vector<16x1xf32>
    %83 = tpu.reciprocal %82 {approx = true} : vector<16x1xf32> -> vector<16x1xf32>
    %84 = vector.broadcast %83 : vector<16x1xf32> to vector<16x16xf32>
    %85 = arith.mulf %80, %84 : vector<16x16xf32>
    %cst_25 = arith.constant dense<0.000000e+00> : vector<16x8xf32>
    %86 = tpu.matmul %85, %73, %cst_25 {dimension_numbers = #tpu.dot_dimension_numbers<[1], [0], [0], [1], [0, 0, 1, 1], [], []>} : vector<16x16xf32>, vector<16x8xf32>, vector<16x8xf32> -> vector<16x8xf32>
    %c0_26 = arith.constant 0 : index
    %c0_27 = arith.constant 0 : index
    %87 = vector.load %arg10[%c0_26, %c0_27] : memref<16x32xf32, #tpu.memory_space<vmem>>, vector<16x8xf32>
    tpu.vector_store %arg10[%c0_26, %c0_27], %86 {strides = array<i32>} : memref<16x32xf32, #tpu.memory_space<vmem>>, vector<16x8xf32>,
    %88 = vector.extract_strided_slice %70 {offsets = [0, 8], sizes = [16, 8], strides = [1, 1]} : vector<16x96xf32> to vector<16x8xf32>
    %89 = vector.extract_strided_slice %70 {offsets = [0, 40], sizes = [16, 8], strides = [1, 1]} : vector<16x96xf32> to vector<16x8xf32>
    %90 = vector.extract_strided_slice %70 {offsets = [0, 72], sizes = [16, 8], strides = [1, 1]} : vector<16x96xf32> to vector<16x8xf32>
    %cst_28 = arith.constant dense<0.000000e+00> : vector<16x16xf32>
    %91 = tpu.matmul %88, %89, %cst_28 {dimension_numbers = #tpu.dot_dimension_numbers<[1], [1], [0], [0], [0, 0, 1, 0], [], []>} : vector<16x8xf32>, vector<16x8xf32>, vector<16x16xf32> -> vector<16x16xf32>
    %92 = arith.addf %91, %6 : vector<16x16xf32>
    %cst_29 = arith.constant dense<0xFF800000> : vector<16xf32>
    %93 = vector.multi_reduction <maximumf>, %92, %cst_29 [1] : vector<16x16xf32> to vector<16xf32>
    %94 = vector.shape_cast %93 : vector<16xf32> to vector<16x1xf32>
    %95 = vector.broadcast %94 : vector<16x1xf32> to vector<16x16xf32>
    %96 = arith.subf %92, %95 : vector<16x16xf32>
    %97 = math.exp %96 : vector<16x16xf32>
    %cst_30 = arith.constant dense<0.000000e+00> : vector<16xf32>
    %98 = vector.multi_reduction <add>, %97, %cst_30 [1] : vector<16x16xf32> to vector<16xf32>
    %99 = vector.shape_cast %98 : vector<16xf32> to vector<16x1xf32>
    %100 = tpu.reciprocal %99 {approx = true} : vector<16x1xf32> -> vector<16x1xf32>
    %101 = vector.broadcast %100 : vector<16x1xf32> to vector<16x16xf32>
    %102 = arith.mulf %97, %101 : vector<16x16xf32>
    %cst_31 = arith.constant dense<0.000000e+00> : vector<16x8xf32>
    %103 = tpu.matmul %102, %90, %cst_31 {dimension_numbers = #tpu.dot_dimension_numbers<[1], [0], [0], [1], [0, 0, 1, 1], [], []>} : vector<16x16xf32>, vector<16x8xf32>, vector<16x8xf32> -> vector<16x8xf32>
    %c0_32 = arith.constant 0 : index
    %c8 = arith.constant 8 : index
    %104 = vector.load %arg10[%c0_32, %c8] : memref<16x32xf32, #tpu.memory_space<vmem>>, vector<16x8xf32>
    tpu.vector_store %arg10[%c0_32, %c8], %103 {strides = array<i32>} : memref<16x32xf32, #tpu.memory_space<vmem>>, vector<16x8xf32>,
    %105 = vector.extract_strided_slice %70 {offsets = [0, 16], sizes = [16, 8], strides = [1, 1]} : vector<16x96xf32> to vector<16x8xf32>
    %106 = vector.extract_strided_slice %70 {offsets = [0, 48], sizes = [16, 8], strides = [1, 1]} : vector<16x96xf32> to vector<16x8xf32>
    %107 = vector.extract_strided_slice %70 {offsets = [0, 80], sizes = [16, 8], strides = [1, 1]} : vector<16x96xf32> to vector<16x8xf32>
    %cst_33 = arith.constant dense<0.000000e+00> : vector<16x16xf32>
    %108 = tpu.matmul %105, %106, %cst_33 {dimension_numbers = #tpu.dot_dimension_numbers<[1], [1], [0], [0], [0, 0, 1, 0], [], []>} : vector<16x8xf32>, vector<16x8xf32>, vector<16x16xf32> -> vector<16x16xf32>
    %109 = arith.addf %108, %6 : vector<16x16xf32>
    %cst_34 = arith.constant dense<0xFF800000> : vector<16xf32>
    %110 = vector.multi_reduction <maximumf>, %109, %cst_34 [1] : vector<16x16xf32> to vector<16xf32>
    %111 = vector.shape_cast %110 : vector<16xf32> to vector<16x1xf32>
    %112 = vector.broadcast %111 : vector<16x1xf32> to vector<16x16xf32>
    %113 = arith.subf %109, %112 : vector<16x16xf32>
    %114 = math.exp %113 : vector<16x16xf32>
    %cst_35 = arith.constant dense<0.000000e+00> : vector<16xf32>
    %115 = vector.multi_reduction <add>, %114, %cst_35 [1] : vector<16x16xf32> to vector<16xf32>
    %116 = vector.shape_cast %115 : vector<16xf32> to vector<16x1xf32>
    %117 = tpu.reciprocal %116 {approx = true} : vector<16x1xf32> -> vector<16x1xf32>
    %118 = vector.broadcast %117 : vector<16x1xf32> to vector<16x16xf32>
    %119 = arith.mulf %114, %118 : vector<16x16xf32>
    %cst_36 = arith.constant dense<0.000000e+00> : vector<16x8xf32>
    %120 = tpu.matmul %119, %107, %cst_36 {dimension_numbers = #tpu.dot_dimension_numbers<[1], [0], [0], [1], [0, 0, 1, 1], [], []>} : vector<16x16xf32>, vector<16x8xf32>, vector<16x8xf32> -> vector<16x8xf32>
    %c0_37 = arith.constant 0 : index
    %c16 = arith.constant 16 : index
    %121 = vector.load %arg10[%c0_37, %c16] : memref<16x32xf32, #tpu.memory_space<vmem>>, vector<16x8xf32>
    tpu.vector_store %arg10[%c0_37, %c16], %120 {strides = array<i32>} : memref<16x32xf32, #tpu.memory_space<vmem>>, vector<16x8xf32>,
    %122 = vector.extract_strided_slice %70 {offsets = [0, 24], sizes = [16, 8], strides = [1, 1]} : vector<16x96xf32> to vector<16x8xf32>
    %123 = vector.extract_strided_slice %70 {offsets = [0, 56], sizes = [16, 8], strides = [1, 1]} : vector<16x96xf32> to vector<16x8xf32>
    %124 = vector.extract_strided_slice %70 {offsets = [0, 88], sizes = [16, 8], strides = [1, 1]} : vector<16x96xf32> to vector<16x8xf32>
    %cst_38 = arith.constant dense<0.000000e+00> : vector<16x16xf32>
    %125 = tpu.matmul %122, %123, %cst_38 {dimension_numbers = #tpu.dot_dimension_numbers<[1], [1], [0], [0], [0, 0, 1, 0], [], []>} : vector<16x8xf32>, vector<16x8xf32>, vector<16x16xf32> -> vector<16x16xf32>
    %126 = arith.addf %125, %6 : vector<16x16xf32>
    %cst_39 = arith.constant dense<0xFF800000> : vector<16xf32>
    %127 = vector.multi_reduction <maximumf>, %126, %cst_39 [1] : vector<16x16xf32> to vector<16xf32>
    %128 = vector.shape_cast %127 : vector<16xf32> to vector<16x1xf32>
    %129 = vector.broadcast %128 : vector<16x1xf32> to vector<16x16xf32>
    %130 = arith.subf %126, %129 : vector<16x16xf32>
    %131 = math.exp %130 : vector<16x16xf32>
    %cst_40 = arith.constant dense<0.000000e+00> : vector<16xf32>
    %132 = vector.multi_reduction <add>, %131, %cst_40 [1] : vector<16x16xf32> to vector<16xf32>
    %133 = vector.shape_cast %132 : vector<16xf32> to vector<16x1xf32>
    %134 = tpu.reciprocal %133 {approx = true} : vector<16x1xf32> -> vector<16x1xf32>
    %135 = vector.broadcast %134 : vector<16x1xf32> to vector<16x16xf32>
    %136 = arith.mulf %131, %135 : vector<16x16xf32>
    %cst_41 = arith.constant dense<0.000000e+00> : vector<16x8xf32>
    %137 = tpu.matmul %136, %124, %cst_41 {dimension_numbers = #tpu.dot_dimension_numbers<[1], [0], [0], [1], [0, 0, 1, 1], [], []>} : vector<16x16xf32>, vector<16x8xf32>, vector<16x8xf32> -> vector<16x8xf32>
    %c0_42 = arith.constant 0 : index
    %c24 = arith.constant 24 : index
    %138 = vector.load %arg10[%c0_42, %c24] : memref<16x32xf32, #tpu.memory_space<vmem>>, vector<16x8xf32>
    tpu.vector_store %arg10[%c0_42, %c24], %137 {strides = array<i32>} : memref<16x32xf32, #tpu.memory_space<vmem>>, vector<16x8xf32>,
    %c0_43 = arith.constant 0 : index
    %c0_44 = arith.constant 0 : index
    %139 = vector.load %arg10[%c0_43, %c0_44] : memref<16x32xf32, #tpu.memory_space<vmem>>, vector<16x32xf32>
    %c0_45 = arith.constant 0 : index
    %c0_46 = arith.constant 0 : index
    %c0_47 = arith.constant 0 : index
    %140 = vector.load %arg5[%c0_45, %c0_46, %c0_47] : memref<2x32x32xf32, #tpu.memory_space<vmem>>, vector<1x32x32xf32>
    %141 = vector.shape_cast %140 : vector<1x32x32xf32> to vector<32x32xf32>
    %cst_48 = arith.constant dense<0.000000e+00> : vector<16x32xf32>
    %142 = tpu.matmul %139, %141, %cst_48 {dimension_numbers = #tpu.dot_dimension_numbers<[1], [1], [0], [0], [0, 0, 1, 0], [], []>} : vector<16x32xf32>, vector<32x32xf32>, vector<16x32xf32> -> vector<16x32xf32>
    %143 = arith.addf %33, %142 : vector<16x32xf32>
    %144 = vector.broadcast %39 : vector<1x32xf32> to vector<16x32xf32>
    %145 = arith.addf %143, %144 : vector<16x32xf32>
    %cst_49 = arith.constant dense<0.000000e+00> : vector<16xf32>
    %146 = vector.multi_reduction <add>, %145, %cst_49 [1] : vector<16x32xf32> to vector<16xf32>
    %147 = vector.shape_cast %146 : vector<16xf32> to vector<16x1xf32>
    %cst_50 = arith.constant 3.200000e+01 : f32
    %148 = vector.broadcast %cst_50 : f32 to vector<16x1xf32>
    %149 = arith.divf %147, %148 : vector<16x1xf32>
    %150 = vector.broadcast %149 : vector<16x1xf32> to vector<16x32xf32>
    %151 = arith.subf %145, %150 : vector<16x32xf32>
    %152 = arith.mulf %151, %151 : vector<16x32xf32>
    %cst_51 = arith.constant dense<0.000000e+00> : vector<16xf32>
    %153 = vector.multi_reduction <add>, %152, %cst_51 [1] : vector<16x32xf32> to vector<16xf32>
    %154 = vector.shape_cast %153 : vector<16xf32> to vector<16x1xf32>
    %cst_52 = arith.constant 3.200000e+01 : f32
    %155 = vector.broadcast %cst_52 : f32 to vector<16x1xf32>
    %156 = arith.divf %154, %155 : vector<16x1xf32>
    %157 = vector.broadcast %149 : vector<16x1xf32> to vector<16x32xf32>
    %158 = arith.subf %145, %157 : vector<16x32xf32>
    %cst_53 = arith.constant 9.99999974E-6 : f32
    %159 = vector.broadcast %cst_53 : f32 to vector<16x1xf32>
    %160 = arith.addf %156, %159 : vector<16x1xf32>
    %161 = math.rsqrt %160 : vector<16x1xf32>
    %162 = vector.broadcast %161 : vector<16x1xf32> to vector<16x32xf32>
    %163 = arith.mulf %158, %162 : vector<16x32xf32>
    %164 = vector.broadcast %40 : vector<1x32xf32> to vector<16x32xf32>
    %165 = arith.mulf %163, %164 : vector<16x32xf32>
    %166 = vector.broadcast %41 : vector<1x32xf32> to vector<16x32xf32>
    %167 = arith.addf %165, %166 : vector<16x32xf32>
    %c0_54 = arith.constant 0 : index
    %c0_55 = arith.constant 0 : index
    %c0_56 = arith.constant 0 : index
    %168 = vector.load %arg6[%c0_54, %c0_55, %c0_56] : memref<2x128x32xf32, #tpu.memory_space<vmem>>, vector<1x128x32xf32>
    %169 = vector.shape_cast %168 : vector<1x128x32xf32> to vector<128x32xf32>
    %cst_57 = arith.constant dense<0.000000e+00> : vector<16x128xf32>
    %170 = tpu.matmul %167, %169, %cst_57 {dimension_numbers = #tpu.dot_dimension_numbers<[1], [1], [0], [0], [0, 0, 1, 0], [], []>} : vector<16x32xf32>, vector<128x32xf32>, vector<16x128xf32> -> vector<16x128xf32>
    %171 = vector.broadcast %42 : vector<1x128xf32> to vector<16x128xf32>
    %172 = arith.addf %170, %171 : vector<16x128xf32>
    %cst_58 = arith.constant 1.702000e+00 : f32
    %173 = vector.broadcast %cst_58 : f32 to vector<16x128xf32>
    %174 = arith.mulf %173, %172 : vector<16x128xf32>
    %175 = arith.negf %174 : vector<16x128xf32>
    %176 = math.exp %175 : vector<16x128xf32>
    %cst_59 = arith.constant 1.000000e+00 : f32
    %177 = vector.broadcast %cst_59 : f32 to vector<16x128xf32>
    %178 = arith.addf %177, %176 : vector<16x128xf32>
    %179 = arith.divf %177, %178 : vector<16x128xf32>
    %180 = arith.mulf %172, %179 : vector<16x128xf32>
    %c0_60 = arith.constant 0 : index
    %c0_61 = arith.constant 0 : index
    %c0_62 = arith.constant 0 : index
    %181 = vector.load %arg7[%c0_60, %c0_61, %c0_62] : memref<2x32x128xf32, #tpu.memory_space<vmem>>, vector<1x32x128xf32>
    %182 = vector.shape_cast %181 : vector<1x32x128xf32> to vector<32x128xf32>
    %cst_63 = arith.constant dense<0.000000e+00> : vector<16x32xf32>
    %183 = tpu.matmul %180, %182, %cst_63 {dimension_numbers = #tpu.dot_dimension_numbers<[1], [1], [0], [0], [0, 0, 1, 0], [], []>} : vector<16x128xf32>, vector<32x128xf32>, vector<16x32xf32> -> vector<16x32xf32>
    %184 = arith.addf %145, %183 : vector<16x32xf32>
    %185 = vector.broadcast %43 : vector<1x32xf32> to vector<16x32xf32>
    %186 = arith.addf %184, %185 : vector<16x32xf32>
    %c1 = arith.constant 1 : index
    %c0_64 = arith.constant 0 : index
    %c0_65 = arith.constant 0 : index
    %187 = vector.load %arg3[%c1, %c0_64, %c0_65] : memref<2x8x128xf32, #tpu.memory_space<vmem>>, vector<1x8x128xf32>
    %188 = vector.shape_cast %187 : vector<1x8x128xf32> to vector<8x128xf32>
    %189 = vector.extract_strided_slice %188 {offsets = [0, 0], sizes = [1, 32], strides = [1, 1]} : vector<8x128xf32> to vector<1x32xf32>
    %190 = vector.extract_strided_slice %188 {offsets = [1, 0], sizes = [1, 32], strides = [1, 1]} : vector<8x128xf32> to vector<1x32xf32>
    %191 = vector.extract_strided_slice %188 {offsets = [2, 0], sizes = [1, 96], strides = [1, 1]} : vector<8x128xf32> to vector<1x96xf32>
    %192 = vector.extract_strided_slice %188 {offsets = [3, 0], sizes = [1, 32], strides = [1, 1]} : vector<8x128xf32> to vector<1x32xf32>
    %193 = vector.extract_strided_slice %188 {offsets = [4, 0], sizes = [1, 32], strides = [1, 1]} : vector<8x128xf32> to vector<1x32xf32>
    %194 = vector.extract_strided_slice %188 {offsets = [5, 0], sizes = [1, 32], strides = [1, 1]} : vector<8x128xf32> to vector<1x32xf32>
    %195 = vector.extract_strided_slice %188 {offsets = [6, 0], sizes = [1, 128], strides = [1, 1]} : vector<8x128xf32> to vector<1x128xf32>
    %196 = vector.extract_strided_slice %188 {offsets = [7, 0], sizes = [1, 32], strides = [1, 1]} : vector<8x128xf32> to vector<1x32xf32>
    %cst_66 = arith.constant dense<0.000000e+00> : vector<16xf32>
    %197 = vector.multi_reduction <add>, %186, %cst_66 [1] : vector<16x32xf32> to vector<16xf32>
    %198 = vector.shape_cast %197 : vector<16xf32> to vector<16x1xf32>
    %cst_67 = arith.constant 3.200000e+01 : f32
    %199 = vector.broadcast %cst_67 : f32 to vector<16x1xf32>
    %200 = arith.divf %198, %199 : vector<16x1xf32>
    %201 = vector.broadcast %200 : vector<16x1xf32> to vector<16x32xf32>
    %202 = arith.subf %186, %201 : vector<16x32xf32>
    %203 = arith.mulf %202, %202 : vector<16x32xf32>
    %cst_68 = arith.constant dense<0.000000e+00> : vector<16xf32>
    %204 = vector.multi_reduction <add>, %203, %cst_68 [1] : vector<16x32xf32> to vector<16xf32>
    %205 = vector.shape_cast %204 : vector<16xf32> to vector<16x1xf32>
    %cst_69 = arith.constant 3.200000e+01 : f32
    %206 = vector.broadcast %cst_69 : f32 to vector<16x1xf32>
    %207 = arith.divf %205, %206 : vector<16x1xf32>
    %208 = vector.broadcast %200 : vector<16x1xf32> to vector<16x32xf32>
    %209 = arith.subf %186, %208 : vector<16x32xf32>
    %cst_70 = arith.constant 9.99999974E-6 : f32
    %210 = vector.broadcast %cst_70 : f32 to vector<16x1xf32>
    %211 = arith.addf %207, %210 : vector<16x1xf32>
    %212 = math.rsqrt %211 : vector<16x1xf32>
    %213 = vector.broadcast %212 : vector<16x1xf32> to vector<16x32xf32>
    %214 = arith.mulf %209, %213 : vector<16x32xf32>
    %215 = vector.broadcast %189 : vector<1x32xf32> to vector<16x32xf32>
    %216 = arith.mulf %214, %215 : vector<16x32xf32>
    %217 = vector.broadcast %190 : vector<1x32xf32> to vector<16x32xf32>
    %218 = arith.addf %216, %217 : vector<16x32xf32>
    %c1_71 = arith.constant 1 : index
    %c0_72 = arith.constant 0 : index
    %c0_73 = arith.constant 0 : index
    %219 = vector.load %arg4[%c1_71, %c0_72, %c0_73] : memref<2x96x32xf32, #tpu.memory_space<vmem>>, vector<1x96x32xf32>
    %220 = vector.shape_cast %219 : vector<1x96x32xf32> to vector<96x32xf32>
    %cst_74 = arith.constant dense<0.000000e+00> : vector<16x96xf32>
    %221 = tpu.matmul %218, %220, %cst_74 {dimension_numbers = #tpu.dot_dimension_numbers<[1], [1], [0], [0], [0, 0, 1, 0], [], []>} : vector<16x32xf32>, vector<96x32xf32>, vector<16x96xf32> -> vector<16x96xf32>
    %222 = vector.broadcast %191 : vector<1x96xf32> to vector<16x96xf32>
    %223 = arith.addf %221, %222 : vector<16x96xf32>
    %224 = vector.extract_strided_slice %223 {offsets = [0, 0], sizes = [16, 8], strides = [1, 1]} : vector<16x96xf32> to vector<16x8xf32>
    %225 = vector.extract_strided_slice %223 {offsets = [0, 32], sizes = [16, 8], strides = [1, 1]} : vector<16x96xf32> to vector<16x8xf32>
    %226 = vector.extract_strided_slice %223 {offsets = [0, 64], sizes = [16, 8], strides = [1, 1]} : vector<16x96xf32> to vector<16x8xf32>
    %cst_75 = arith.constant dense<0.000000e+00> : vector<16x16xf32>
    %227 = tpu.matmul %224, %225, %cst_75 {dimension_numbers = #tpu.dot_dimension_numbers<[1], [1], [0], [0], [0, 0, 1, 0], [], []>} : vector<16x8xf32>, vector<16x8xf32>, vector<16x16xf32> -> vector<16x16xf32>
    %228 = arith.addf %227, %6 : vector<16x16xf32>
    %cst_76 = arith.constant dense<0xFF800000> : vector<16xf32>
    %229 = vector.multi_reduction <maximumf>, %228, %cst_76 [1] : vector<16x16xf32> to vector<16xf32>
    %230 = vector.shape_cast %229 : vector<16xf32> to vector<16x1xf32>
    %231 = vector.broadcast %230 : vector<16x1xf32> to vector<16x16xf32>
    %232 = arith.subf %228, %231 : vector<16x16xf32>
    %233 = math.exp %232 : vector<16x16xf32>
    %cst_77 = arith.constant dense<0.000000e+00> : vector<16xf32>
    %234 = vector.multi_reduction <add>, %233, %cst_77 [1] : vector<16x16xf32> to vector<16xf32>
    %235 = vector.shape_cast %234 : vector<16xf32> to vector<16x1xf32>
    %236 = tpu.reciprocal %235 {approx = true} : vector<16x1xf32> -> vector<16x1xf32>
    %237 = vector.broadcast %236 : vector<16x1xf32> to vector<16x16xf32>
    %238 = arith.mulf %233, %237 : vector<16x16xf32>
    %cst_78 = arith.constant dense<0.000000e+00> : vector<16x8xf32>
    %239 = tpu.matmul %238, %226, %cst_78 {dimension_numbers = #tpu.dot_dimension_numbers<[1], [0], [0], [1], [0, 0, 1, 1], [], []>} : vector<16x16xf32>, vector<16x8xf32>, vector<16x8xf32> -> vector<16x8xf32>
    %c0_79 = arith.constant 0 : index
    %c0_80 = arith.constant 0 : index
    %240 = vector.load %arg10[%c0_79, %c0_80] : memref<16x32xf32, #tpu.memory_space<vmem>>, vector<16x8xf32>
    tpu.vector_store %arg10[%c0_79, %c0_80], %239 {strides = array<i32>} : memref<16x32xf32, #tpu.memory_space<vmem>>, vector<16x8xf32>,
    %241 = vector.extract_strided_slice %223 {offsets = [0, 8], sizes = [16, 8], strides = [1, 1]} : vector<16x96xf32> to vector<16x8xf32>
    %242 = vector.extract_strided_slice %223 {offsets = [0, 40], sizes = [16, 8], strides = [1, 1]} : vector<16x96xf32> to vector<16x8xf32>
    %243 = vector.extract_strided_slice %223 {offsets = [0, 72], sizes = [16, 8], strides = [1, 1]} : vector<16x96xf32> to vector<16x8xf32>
    %cst_81 = arith.constant dense<0.000000e+00> : vector<16x16xf32>
    %244 = tpu.matmul %241, %242, %cst_81 {dimension_numbers = #tpu.dot_dimension_numbers<[1], [1], [0], [0], [0, 0, 1, 0], [], []>} : vector<16x8xf32>, vector<16x8xf32>, vector<16x16xf32> -> vector<16x16xf32>
    %245 = arith.addf %244, %6 : vector<16x16xf32>
    %cst_82 = arith.constant dense<0xFF800000> : vector<16xf32>
    %246 = vector.multi_reduction <maximumf>, %245, %cst_82 [1] : vector<16x16xf32> to vector<16xf32>
    %247 = vector.shape_cast %246 : vector<16xf32> to vector<16x1xf32>
    %248 = vector.broadcast %247 : vector<16x1xf32> to vector<16x16xf32>
    %249 = arith.subf %245, %248 : vector<16x16xf32>
    %250 = math.exp %249 : vector<16x16xf32>
    %cst_83 = arith.constant dense<0.000000e+00> : vector<16xf32>
    %251 = vector.multi_reduction <add>, %250, %cst_83 [1] : vector<16x16xf32> to vector<16xf32>
    %252 = vector.shape_cast %251 : vector<16xf32> to vector<16x1xf32>
    %253 = tpu.reciprocal %252 {approx = true} : vector<16x1xf32> -> vector<16x1xf32>
    %254 = vector.broadcast %253 : vector<16x1xf32> to vector<16x16xf32>
    %255 = arith.mulf %250, %254 : vector<16x16xf32>
    %cst_84 = arith.constant dense<0.000000e+00> : vector<16x8xf32>
    %256 = tpu.matmul %255, %243, %cst_84 {dimension_numbers = #tpu.dot_dimension_numbers<[1], [0], [0], [1], [0, 0, 1, 1], [], []>} : vector<16x16xf32>, vector<16x8xf32>, vector<16x8xf32> -> vector<16x8xf32>
    %c0_85 = arith.constant 0 : index
    %c8_86 = arith.constant 8 : index
    %257 = vector.load %arg10[%c0_85, %c8_86] : memref<16x32xf32, #tpu.memory_space<vmem>>, vector<16x8xf32>
    tpu.vector_store %arg10[%c0_85, %c8_86], %256 {strides = array<i32>} : memref<16x32xf32, #tpu.memory_space<vmem>>, vector<16x8xf32>,
    %258 = vector.extract_strided_slice %223 {offsets = [0, 16], sizes = [16, 8], strides = [1, 1]} : vector<16x96xf32> to vector<16x8xf32>
    %259 = vector.extract_strided_slice %223 {offsets = [0, 48], sizes = [16, 8], strides = [1, 1]} : vector<16x96xf32> to vector<16x8xf32>
    %260 = vector.extract_strided_slice %223 {offsets = [0, 80], sizes = [16, 8], strides = [1, 1]} : vector<16x96xf32> to vector<16x8xf32>
    %cst_87 = arith.constant dense<0.000000e+00> : vector<16x16xf32>
    %261 = tpu.matmul %258, %259, %cst_87 {dimension_numbers = #tpu.dot_dimension_numbers<[1], [1], [0], [0], [0, 0, 1, 0], [], []>} : vector<16x8xf32>, vector<16x8xf32>, vector<16x16xf32> -> vector<16x16xf32>
    %262 = arith.addf %261, %6 : vector<16x16xf32>
    %cst_88 = arith.constant dense<0xFF800000> : vector<16xf32>
    %263 = vector.multi_reduction <maximumf>, %262, %cst_88 [1] : vector<16x16xf32> to vector<16xf32>
    %264 = vector.shape_cast %263 : vector<16xf32> to vector<16x1xf32>
    %265 = vector.broadcast %264 : vector<16x1xf32> to vector<16x16xf32>
    %266 = arith.subf %262, %265 : vector<16x16xf32>
    %267 = math.exp %266 : vector<16x16xf32>
    %cst_89 = arith.constant dense<0.000000e+00> : vector<16xf32>
    %268 = vector.multi_reduction <add>, %267, %cst_89 [1] : vector<16x16xf32> to vector<16xf32>
    %269 = vector.shape_cast %268 : vector<16xf32> to vector<16x1xf32>
    %270 = tpu.reciprocal %269 {approx = true} : vector<16x1xf32> -> vector<16x1xf32>
    %271 = vector.broadcast %270 : vector<16x1xf32> to vector<16x16xf32>
    %272 = arith.mulf %267, %271 : vector<16x16xf32>
    %cst_90 = arith.constant dense<0.000000e+00> : vector<16x8xf32>
    %273 = tpu.matmul %272, %260, %cst_90 {dimension_numbers = #tpu.dot_dimension_numbers<[1], [0], [0], [1], [0, 0, 1, 1], [], []>} : vector<16x16xf32>, vector<16x8xf32>, vector<16x8xf32> -> vector<16x8xf32>
    %c0_91 = arith.constant 0 : index
    %c16_92 = arith.constant 16 : index
    %274 = vector.load %arg10[%c0_91, %c16_92] : memref<16x32xf32, #tpu.memory_space<vmem>>, vector<16x8xf32>
    tpu.vector_store %arg10[%c0_91, %c16_92], %273 {strides = array<i32>} : memref<16x32xf32, #tpu.memory_space<vmem>>, vector<16x8xf32>,
    %275 = vector.extract_strided_slice %223 {offsets = [0, 24], sizes = [16, 8], strides = [1, 1]} : vector<16x96xf32> to vector<16x8xf32>
    %276 = vector.extract_strided_slice %223 {offsets = [0, 56], sizes = [16, 8], strides = [1, 1]} : vector<16x96xf32> to vector<16x8xf32>
    %277 = vector.extract_strided_slice %223 {offsets = [0, 88], sizes = [16, 8], strides = [1, 1]} : vector<16x96xf32> to vector<16x8xf32>
    %cst_93 = arith.constant dense<0.000000e+00> : vector<16x16xf32>
    %278 = tpu.matmul %275, %276, %cst_93 {dimension_numbers = #tpu.dot_dimension_numbers<[1], [1], [0], [0], [0, 0, 1, 0], [], []>} : vector<16x8xf32>, vector<16x8xf32>, vector<16x16xf32> -> vector<16x16xf32>
    %279 = arith.addf %278, %6 : vector<16x16xf32>
    %cst_94 = arith.constant dense<0xFF800000> : vector<16xf32>
    %280 = vector.multi_reduction <maximumf>, %279, %cst_94 [1] : vector<16x16xf32> to vector<16xf32>
    %281 = vector.shape_cast %280 : vector<16xf32> to vector<16x1xf32>
    %282 = vector.broadcast %281 : vector<16x1xf32> to vector<16x16xf32>
    %283 = arith.subf %279, %282 : vector<16x16xf32>
    %284 = math.exp %283 : vector<16x16xf32>
    %cst_95 = arith.constant dense<0.000000e+00> : vector<16xf32>
    %285 = vector.multi_reduction <add>, %284, %cst_95 [1] : vector<16x16xf32> to vector<16xf32>
    %286 = vector.shape_cast %285 : vector<16xf32> to vector<16x1xf32>
    %287 = tpu.reciprocal %286 {approx = true} : vector<16x1xf32> -> vector<16x1xf32>
    %288 = vector.broadcast %287 : vector<16x1xf32> to vector<16x16xf32>
    %289 = arith.mulf %284, %288 : vector<16x16xf32>
    %cst_96 = arith.constant dense<0.000000e+00> : vector<16x8xf32>
    %290 = tpu.matmul %289, %277, %cst_96 {dimension_numbers = #tpu.dot_dimension_numbers<[1], [0], [0], [1], [0, 0, 1, 1], [], []>} : vector<16x16xf32>, vector<16x8xf32>, vector<16x8xf32> -> vector<16x8xf32>
    %c0_97 = arith.constant 0 : index
    %c24_98 = arith.constant 24 : index
    %291 = vector.load %arg10[%c0_97, %c24_98] : memref<16x32xf32, #tpu.memory_space<vmem>>, vector<16x8xf32>
    tpu.vector_store %arg10[%c0_97, %c24_98], %290 {strides = array<i32>} : memref<16x32xf32, #tpu.memory_space<vmem>>, vector<16x8xf32>,
    %c0_99 = arith.constant 0 : index
    %c0_100 = arith.constant 0 : index
    %292 = vector.load %arg10[%c0_99, %c0_100] : memref<16x32xf32, #tpu.memory_space<vmem>>, vector<16x32xf32>
    %c1_101 = arith.constant 1 : index
    %c0_102 = arith.constant 0 : index
    %c0_103 = arith.constant 0 : index
    %293 = vector.load %arg5[%c1_101, %c0_102, %c0_103] : memref<2x32x32xf32, #tpu.memory_space<vmem>>, vector<1x32x32xf32>
    %294 = vector.shape_cast %293 : vector<1x32x32xf32> to vector<32x32xf32>
    %cst_104 = arith.constant dense<0.000000e+00> : vector<16x32xf32>
    %295 = tpu.matmul %292, %294, %cst_104 {dimension_numbers = #tpu.dot_dimension_numbers<[1], [1], [0], [0], [0, 0, 1, 0], [], []>} : vector<16x32xf32>, vector<32x32xf32>, vector<16x32xf32> -> vector<16x32xf32>
    %296 = arith.addf %186, %295 : vector<16x32xf32>
    %297 = vector.broadcast %192 : vector<1x32xf32> to vector<16x32xf32>
    %298 = arith.addf %296, %297 : vector<16x32xf32>
    %cst_105 = arith.constant dense<0.000000e+00> : vector<16xf32>
    %299 = vector.multi_reduction <add>, %298, %cst_105 [1] : vector<16x32xf32> to vector<16xf32>
    %300 = vector.shape_cast %299 : vector<16xf32> to vector<16x1xf32>
    %cst_106 = arith.constant 3.200000e+01 : f32
    %301 = vector.broadcast %cst_106 : f32 to vector<16x1xf32>
    %302 = arith.divf %300, %301 : vector<16x1xf32>
    %303 = vector.broadcast %302 : vector<16x1xf32> to vector<16x32xf32>
    %304 = arith.subf %298, %303 : vector<16x32xf32>
    %305 = arith.mulf %304, %304 : vector<16x32xf32>
    %cst_107 = arith.constant dense<0.000000e+00> : vector<16xf32>
    %306 = vector.multi_reduction <add>, %305, %cst_107 [1] : vector<16x32xf32> to vector<16xf32>
    %307 = vector.shape_cast %306 : vector<16xf32> to vector<16x1xf32>
    %cst_108 = arith.constant 3.200000e+01 : f32
    %308 = vector.broadcast %cst_108 : f32 to vector<16x1xf32>
    %309 = arith.divf %307, %308 : vector<16x1xf32>
    %310 = vector.broadcast %302 : vector<16x1xf32> to vector<16x32xf32>
    %311 = arith.subf %298, %310 : vector<16x32xf32>
    %cst_109 = arith.constant 9.99999974E-6 : f32
    %312 = vector.broadcast %cst_109 : f32 to vector<16x1xf32>
    %313 = arith.addf %309, %312 : vector<16x1xf32>
    %314 = math.rsqrt %313 : vector<16x1xf32>
    %315 = vector.broadcast %314 : vector<16x1xf32> to vector<16x32xf32>
    %316 = arith.mulf %311, %315 : vector<16x32xf32>
    %317 = vector.broadcast %193 : vector<1x32xf32> to vector<16x32xf32>
    %318 = arith.mulf %316, %317 : vector<16x32xf32>
    %319 = vector.broadcast %194 : vector<1x32xf32> to vector<16x32xf32>
    %320 = arith.addf %318, %319 : vector<16x32xf32>
    %c1_110 = arith.constant 1 : index
    %c0_111 = arith.constant 0 : index
    %c0_112 = arith.constant 0 : index
    %321 = vector.load %arg6[%c1_110, %c0_111, %c0_112] : memref<2x128x32xf32, #tpu.memory_space<vmem>>, vector<1x128x32xf32>
    %322 = vector.shape_cast %321 : vector<1x128x32xf32> to vector<128x32xf32>
    %cst_113 = arith.constant dense<0.000000e+00> : vector<16x128xf32>
    %323 = tpu.matmul %320, %322, %cst_113 {dimension_numbers = #tpu.dot_dimension_numbers<[1], [1], [0], [0], [0, 0, 1, 0], [], []>} : vector<16x32xf32>, vector<128x32xf32>, vector<16x128xf32> -> vector<16x128xf32>
    %324 = vector.broadcast %195 : vector<1x128xf32> to vector<16x128xf32>
    %325 = arith.addf %323, %324 : vector<16x128xf32>
    %cst_114 = arith.constant 1.702000e+00 : f32
    %326 = vector.broadcast %cst_114 : f32 to vector<16x128xf32>
    %327 = arith.mulf %326, %325 : vector<16x128xf32>
    %328 = arith.negf %327 : vector<16x128xf32>
    %329 = math.exp %328 : vector<16x128xf32>
    %cst_115 = arith.constant 1.000000e+00 : f32
    %330 = vector.broadcast %cst_115 : f32 to vector<16x128xf32>
    %331 = arith.addf %330, %329 : vector<16x128xf32>
    %332 = arith.divf %330, %331 : vector<16x128xf32>
    %333 = arith.mulf %325, %332 : vector<16x128xf32>
    %c1_116 = arith.constant 1 : index
    %c0_117 = arith.constant 0 : index
    %c0_118 = arith.constant 0 : index
    %334 = vector.load %arg7[%c1_116, %c0_117, %c0_118] : memref<2x32x128xf32, #tpu.memory_space<vmem>>, vector<1x32x128xf32>
    %335 = vector.shape_cast %334 : vector<1x32x128xf32> to vector<32x128xf32>
    %cst_119 = arith.constant dense<0.000000e+00> : vector<16x32xf32>
    %336 = tpu.matmul %333, %335, %cst_119 {dimension_numbers = #tpu.dot_dimension_numbers<[1], [1], [0], [0], [0, 0, 1, 0], [], []>} : vector<16x128xf32>, vector<32x128xf32>, vector<16x32xf32> -> vector<16x32xf32>
    %337 = arith.addf %298, %336 : vector<16x32xf32>
    %338 = vector.broadcast %196 : vector<1x32xf32> to vector<16x32xf32>
    %339 = arith.addf %337, %338 : vector<16x32xf32>
    %cst_120 = arith.constant dense<0.000000e+00> : vector<16xf32>
    %340 = vector.multi_reduction <add>, %339, %cst_120 [1] : vector<16x32xf32> to vector<16xf32>
    %341 = vector.shape_cast %340 : vector<16xf32> to vector<16x1xf32>
    %cst_121 = arith.constant 3.200000e+01 : f32
    %342 = vector.broadcast %cst_121 : f32 to vector<16x1xf32>
    %343 = arith.divf %341, %342 : vector<16x1xf32>
    %344 = vector.broadcast %343 : vector<16x1xf32> to vector<16x32xf32>
    %345 = arith.subf %339, %344 : vector<16x32xf32>
    %346 = arith.mulf %345, %345 : vector<16x32xf32>
    %cst_122 = arith.constant dense<0.000000e+00> : vector<16xf32>
    %347 = vector.multi_reduction <add>, %346, %cst_122 [1] : vector<16x32xf32> to vector<16xf32>
    %348 = vector.shape_cast %347 : vector<16xf32> to vector<16x1xf32>
    %cst_123 = arith.constant 3.200000e+01 : f32
    %349 = vector.broadcast %cst_123 : f32 to vector<16x1xf32>
    %350 = arith.divf %348, %349 : vector<16x1xf32>
    %351 = vector.broadcast %343 : vector<16x1xf32> to vector<16x32xf32>
    %352 = arith.subf %339, %351 : vector<16x32xf32>
    %cst_124 = arith.constant 9.99999974E-6 : f32
    %353 = vector.broadcast %cst_124 : f32 to vector<16x1xf32>
    %354 = arith.addf %350, %353 : vector<16x1xf32>
    %355 = math.rsqrt %354 : vector<16x1xf32>
    %356 = vector.broadcast %355 : vector<16x1xf32> to vector<16x32xf32>
    %357 = arith.mulf %352, %356 : vector<16x32xf32>
    %358 = vector.broadcast %3 : vector<1x32xf32> to vector<16x32xf32>
    %359 = arith.mulf %357, %358 : vector<16x32xf32>
    %360 = vector.broadcast %4 : vector<1x32xf32> to vector<16x32xf32>
    %361 = arith.addf %359, %360 : vector<16x32xf32>
    %c0_125 = arith.constant 0 : index
    %c0_126 = arith.constant 0 : index
    %362 = vector.load %arg8[%c0_125, %c0_126] : memref<128x32xf32, #tpu.memory_space<vmem>>, vector<128x32xf32>
    %cst_127 = arith.constant dense<0.000000e+00> : vector<16x128xf32>
    %363 = tpu.matmul %361, %362, %cst_127 {dimension_numbers = #tpu.dot_dimension_numbers<[1], [1], [0], [0], [0, 0, 1, 0], [], []>} : vector<16x32xf32>, vector<128x32xf32>, vector<16x128xf32> -> vector<16x128xf32>
    %364 = vector.broadcast %5 : vector<1x128xf32> to vector<16x128xf32>
    %365 = arith.addf %363, %364 : vector<16x128xf32>
    %c0_128 = arith.constant 0 : index
    %c0_129 = arith.constant 0 : index
    %366 = vector.load %arg9[%c0_128, %c0_129] : memref<16x128xf32, #tpu.memory_space<vmem>>, vector<16x128xf32>
    tpu.vector_store %arg9[%c0_128, %c0_129], %365 {strides = array<i32>} : memref<16x128xf32, #tpu.memory_space<vmem>>, vector<16x128xf32>,
    return
  }
}

</mosaic_0001>

<bundles_post_ra>
// kernel: custom-call.2
= control target key start
LH: loop header
LB: loop body
LE: loop exit
PB: predicated region body
PF: predicated region fallthrough
CT: control target
= control target key end

     0   :  { %s6_s0 = inlined_call_operand.vmem [shape: f32[2,16], index: 0, kind: output, shape index: {}]  }

// kernel: clip_probe_forward.1
= control target key start
LH: loop header
LB: loop body
LE: loop exit
PB: predicated region body
PF: predicated region fallthrough
CT: control target
= control target key end

     0   :  { %vm49_vm0 = vcmask 523264   ;;  %vm143_vm2 = vcmask 261120   ;;  %v171_v38 = vlaneseq  ;;  %vm361_vm4 = vcmask 64512   ;;  %s4405_s19 = smov 96   ;;  %s4406_s20 = smov 88   ;;  %s5356_s1 = inlined_call_operand.vmem [shape: f32[32,192], index: 1, kind: input, shape index: {}]   ;;  %s5357_s0 = inlined_call_operand.vmem [shape: f32[16,192], index: 0, kind: input, shape index: {}]   ;;  %s5358_s2 = inlined_call_operand.vmem [shape: f32[40,128], index: 2, kind: input, shape index: {}]   ;;  %s5359_s4 = inlined_call_operand.vmem [shape: f32[2,96,32], index: 4, kind: input, shape index: {}]   ;;  %s5360_s3 = inlined_call_operand.vmem [shape: f32[2,8,128], index: 3, kind: input, shape index: {}]   ;;  %s5361_s5 = inlined_call_operand.vmem [shape: f32[2,32,32], index: 5, kind: input, shape index: {}]   ;;  %s5362_s6 = inlined_call_operand.vmem [shape: f32[2,128,32], index: 6, kind: input, shape index: {}]   ;;  %s5363_s7 = inlined_call_operand.vmem [shape: f32[2,32,128], index: 7, kind: input, shape index: {}]   ;;  %s5364_s8 = inlined_call_operand.vmem [shape: f32[128,32], index: 8, kind: input, shape index: {}]   ;;  %s5365_s9 = inlined_call_operand.vmem [shape: f32[16,128], index: 9, kind: output, shape index: {}]  }
   0x1   :  { %v42_v0 = vld [vmem:[%s5356_s1 + $0x8] sm:$0xff]  ;;  %v44_v1 = vld [vmem:[%s5356_s1 + $0x18] sm:$0xff]  ;;  %vm3859_vm1 = vmpackc.low %vm49_vm0, %vm49_vm0  ;;  %s4407_s21 = smov 120   ;;  %vm445_vm6 = vcmask 130048   ;;  %s4408_s26 = smov 64   ;;  %vm765_vm7 = vcmask 130112  }
   0x2   :  { %v3858_v2 = vpack.c.bf16 %v44_v1, %v42_v0  ;;  %v41_v3 = vld [vmem:[%s5356_s1] sm:$0xff]  ;;  %v43_v4 = vld [vmem:[%s5356_s1 + $0x10] sm:$0xff]  ;;  %v46_v5 = vld [vmem:[%s5356_s1 + $0x28] sm:$0xff]  ;;  %v4519_v42 = vshrl.u32 %v171_v38, 7  ;;  %s4409_s27 = smov 56   ;;  %s4410_s28 = smov 72  }
   0x3   :  { %v3861_v6 = vpack.c.bf16 %v43_v4, %v41_v3  ;;  %v48_v7 = vld [vmem:[%s5356_s1 + $0x38] sm:$0xff]  ;;  %v38_v9 = vld [vmem:[%s5357_s0 + $0x8] sm:$0xff]  ;;  %v45_v10 = vld [vmem:[%s5356_s1 + $0x20] sm:$0xff]  ;;  %s4411_s29 = smov 112   ;;  %s4412_s30 = smov 104   ;;  %vm976_vm8 = vcmask 195712  }
   0x4   :  { %3860 = vmatprep.subr.msk.bf16.mxu1 %vm3859_vm1, %v3858_v2  ;;  %v3863_v8 = vpack.c.bf16 %v48_v7, %v46_v5  ;;  %3188 = vmatprep.mubr.msk.f32.mxu1 %vm49_vm0, %v38_v9  ;;  %v47_v11 = vld [vmem:[%s5356_s1 + $0x30] sm:$0xff]  ;;  %v37_v13 = vld [vmem:[%s5357_s0] sm:$0xff]  ;;  %v40_v14 = vld [vmem:[%s5357_s0 + $0x18] sm:$0xff]  ;;  %v4522_v44 = vsub.s32 0, %v4519_v42  ;;  %v4528_v46 = vsub.s32 1, %v4519_v42  ;;  %s4413_s10 = smov 80  }
   0x5   :  { %3862 = vmatpush1.bf16.xpose.msra.mxu1 %v3861_v6  ;;  %v3866_v12 = vpack.c.bf16 %v47_v11, %v45_v10  ;;  %v39_v15 = vld [vmem:[%s5357_s0 + $0x10] sm:$0xff]  ;;  %v35_v16 = vld [vmem:[%s5358_s2 + $0x18] sm:$0xff]  ;;  %v36_v20 = vld [vmem:[%s5358_s2 + $0x20] sm:$0xff]  ;;  %s4414_s11 = smov 40   ;;  %s4415_s12 = smov 48   ;;  %vm1187_vm9 = vcmask 261312  }
   0x6   :  { %3865 = vmatprep.subr.msk.bf16.mxu1 %vm3859_vm1, %v3863_v8  ;;  %v32_v45 = vld [vmem:[%s5358_s2] sm:$0xff]  ;;  %vm4542_vm3 = vmpackc.low %vm143_vm2, %vm143_vm2  ;;  %v223_v61 = vld [vmem:[%s5359_s4 + $0x8] sm:$0xff]  ;;  %s4416_s1 = smov 8   ;;  %s4417_s23 = smov 16  }
   0x7   :  { %v174_v47 = vrot.slane %v32_v45, %v4522_v44  ;;  %v180_v50 = vrot.slane %v32_v45, %v4528_v46  ;;  %v222_v60 = vld [vmem:[%s5359_s4] sm:$0xff]  ;;  %v224_v62 = vld [vmem:[%s5359_s4 + $0x10] sm:$0xff]  ;;  %v225_v0 = vld [vmem:[%s5359_s4 + $0x18] sm:$0xff]  ;;  %s4418_s24 = smov 24  }
   0x8   :  { %v3868_v63 = vpack.c.bf16 %v223_v61, %v222_v60  ;;  %v3874_v1 = vpack.c.bf16 %v225_v0, %v224_v62  ;;  %v226_v2 = vld [vmem:[%s5359_s4 + $0x20] sm:$0xff]  ;;  %v227_v3 = vld [vmem:[%s5359_s4 + $0x28] sm:$0xff]  ;;  %vm4646_vm5 = vmpackc.low %vm361_vm4, %vm361_vm4 }
   0x9   :  { %v3880_v4 = vpack.c.bf16 %v227_v3, %v226_v2  ;;  %v4664_v61 = vld [vmem:[%s5358_s2 + $0x10] sm:$0xff] }
   0xd   :  { %3867 = vmatpush1.bf16.xpose.msra.mxu1 %v3866_v12 }
   0xe   :  { %3870 = vmatprep.subr.msk.bf16.mxu1 %vm4542_vm3, %v3868_v63 }
  0x14   :  { %133 = vmatmul.mubr.f32.vlgmr.msra.gmra.mrb[0].mxu1 %v37_v13 }
  0x15   :  { %3189 = vmatprep.mubr.msk.f32.mxu1 %vm49_vm0, %v40_v14  ;;  %3873 = vmatpush3.bf16.xpose.msk.msra.mxu1 %vm4542_vm3, %v3868_v63 }
  0x16   :  { %3876 = vmatprep.subr.msk.bf16.mxu1 %vm4542_vm3, %v3874_v1 }
  0x18   :  { %138 = vmatmul.mubr.f32.gmra.mrb[2].mxu1 %v39_v15  ;;  %v228_v15 = vld [vmem:[%s5359_s4 + $0x30] sm:$0xff] }
  0x1d   :  { %3879 = vmatpush3.bf16.xpose.msk.msra.mxu1 %vm4542_vm3, %v3874_v1 }
  0x1e   :  { %3882 = vmatprep.subr.msk.bf16.mxu1 %vm4542_vm3, %v3880_v4 }
  0x25   :  { %3885 = vmatpush3.bf16.xpose.msk.msra.mxu1 %vm4542_vm3, %v3880_v4 }
  0xe7   :  { %v134_v17 = vpop.f32.mrb[0].mxu1 }
  0xe8   :  { %v135_v18 = vadd.f32 %v134_v17, %v35_v16  ;;  %v136_v19 = vpop.f32.mrb[1].mxu1  ;;  %v229_v16 = vld [vmem:[%s5359_s4 + $0x38] sm:$0xff] }
  0xe9   :  { %v3886_v17 = vpack.c.bf16 %v229_v16, %v228_v15  ;;  %v231_v19 = vld [vmem:[%s5359_s4 + $0x48] sm:$0xff] }
  0xea   :  { %v144_v21 = vsel %vm143_vm2, %v135_v18, 0.0 }
  0xeb   :  { %v139_v22 = vpop.f32.mrb[2].mxu1  ;;  %145 = vadd.xlane.f32.xlu0 %v144_v21  ;;  %3888 = vmatprep.subr.msk.bf16.mxu1 %vm4542_vm3, %v3886_v17  ;;  %v232_v21 = vld [vmem:[%s5359_s4 + $0x50] sm:$0xff] }
  0xec   :  { %v140_v23 = vadd.f32 %v139_v22, %v36_v20  ;;  %v141_v24 = vpop.f32.mrb[3].mxu1  ;;  %3891 = vmatpush3.bf16.xpose.msk.msra.mxu1 %vm4542_vm3, %v3886_v17  ;;  %v233_v22 = vld [vmem:[%s5359_s4 + $0x58] sm:$0xff] }
  0xee   :  { %v147_v25 = vsel %vm143_vm2, %v140_v23, 0.0 }
  0xef   :  { %148 = vadd.xlane.f32.xlu0 %v147_v25 }
 0x178   :  { %v146_v26 = vpop.xlane.xlu0 %145 }
 0x179   :  { %v151_v27 = vmul.f32 0.03125, %v146_v26 }
 0x17b   :  { %v153_v28 = vsub.f32 %v135_v18, %v151_v27  ;;  %v230_v18 = vld [vmem:[%s5359_s4 + $0x40] sm:$0xff] }
 0x17c   :  { %v149_v29 = vpop.xlane.xlu0 %148  ;;  %v3892_v20 = vpack.c.bf16 %v231_v19, %v230_v18 }
 0x17d   :  { %v152_v30 = vmul.f32 0.03125, %v149_v29  ;;  %v155_v31 = vmul.f32 %v153_v28, %v153_v28 }
 0x17e   :  { %3894 = vmatprep.subr.msk.bf16.mxu1 %vm4542_vm3, %v3892_v20 }
 0x17f   :  { %v154_v32 = vsub.f32 %v140_v23, %v152_v30  ;;  %v157_v33 = vsel %vm143_vm2, %v155_v31, 0.0  ;;  %3897 = vmatpush3.bf16.xpose.msk.msra.mxu1 %vm4542_vm3, %v3892_v20  ;;  %v3898_v23 = vpack.c.bf16 %v233_v22, %v232_v21  ;;  %v4613_v30 = vld [vmem:[%s5360_s3] sm:$0xff] }
 0x180   :  { %158 = vadd.xlane.f32.xlu1 %v157_v33  ;;  %v213_v31 = vrot.slane %v4613_v30, %v4522_v44 }
 0x181   :  { %v156_v34 = vmul.f32 %v154_v32, %v154_v32  ;;  %3900 = vmatprep.subr.msk.bf16.mxu1 %vm4542_vm3, %v3898_v23 }
 0x183   :  { %v160_v35 = vsel %vm143_vm2, %v156_v34, 0.0  ;;  %v219_v34 = vrot.slane %v4613_v30, %v4528_v46 }
 0x184   :  { %161 = vadd.xlane.f32.xlu1 %v160_v35 }
 0x187   :  { %3903 = vmatpush3.bf16.xpose.msk.msra.mxu1 %vm4542_vm3, %v3898_v23 }
 0x20d   :  { %v159_v36 = vpop.xlane.xlu1 %158 }
 0x20e   :  { %v163_v37 = vmul.f32 0.03125, %v159_v36 }
 0x210   :  { %v165_v39 = vadd.f32 1e-05, %v163_v37 }
 0x211   :  { %v162_v40 = vpop.xlane.xlu1 %161 }
 0x212   :  { %4298 = vrsqrt.f32 %v165_v39  ;;  %v164_v41 = vmul.f32 0.03125, %v162_v40 }
 0x214   :  { %v166_v43 = vadd.f32 1e-05, %v164_v41  ;;  %v4622_v41 = vsub.s32 2, %v4519_v42 }
 0x216   :  { %4300 = vrsqrt.f32 %v166_v43  ;;  %v237_v43 = vrot.slane %v4613_v30, %v4622_v41 }
 0x21c   :  { %v4299_v48 = vpop.eup %4298 }
 0x21d   :  { %v169_v49 = vmul.f32 %v4299_v48, %v153_v28 }
 0x21f   :  { %v175_v51 = vmul.f32 %v174_v47, %v169_v49 }
 0x220   :  { %v4301_v52 = vpop.eup %4300 }
 0x221   :  { %v4532_v53 = vadd.f32 %v180_v50, %v175_v51  ;;  %v170_v54 = vmul.f32 %v4301_v52, %v154_v32 }
 0x223   :  { %v184_v55 = vsel %vm143_vm2, %v4532_v53, 0.0  ;;  %v176_v56 = vmul.f32 %v174_v47, %v170_v54 }
 0x224   :  { %185 = vadd.xlane.f32.xlu0 %v184_v55 }
 0x225   :  { %v4536_v57 = vadd.f32 %v180_v50, %v176_v56 }
 0x227   :  { %v187_v58 = vsel %vm143_vm2, %v4536_v57, 0.0 }
 0x228   :  { %188 = vadd.xlane.f32.xlu1 %v187_v58  ;;  %v4659_v58 = vld [vmem:[%s5358_s2 + $0x8] sm:$0xff] }
 0x2b1   :  { %v186_v5 = vpop.xlane.xlu0 %185 }
 0x2b2   :  { %v190_v6 = vmul.f32 0.03125, %v186_v5 }
 0x2b4   :  { %v192_v7 = vsub.f32 %v4532_v53, %v190_v6 }
 0x2b5   :  { %v189_v8 = vpop.xlane.xlu1 %188 }
 0x2b6   :  { %v191_v9 = vmul.f32 0.03125, %v189_v8  ;;  %v194_v10 = vmul.f32 %v192_v7, %v192_v7 }
 0x2b8   :  { %v193_v11 = vsub.f32 %v4536_v57, %v191_v9  ;;  %v196_v12 = vsel %vm143_vm2, %v194_v10, 0.0 }
 0x2b9   :  { %197 = vadd.xlane.f32.xlu0 %v196_v12 }
 0x2ba   :  { %v195_v13 = vmul.f32 %v193_v11, %v193_v11 }
 0x2bc   :  { %v199_v14 = vsel %vm143_vm2, %v195_v13, 0.0 }
 0x2bd   :  { %200 = vadd.xlane.f32.xlu1 %v199_v14 }
 0x346   :  { %v198_v24 = vpop.xlane.xlu0 %197 }
 0x347   :  { %v202_v25 = vmul.f32 0.03125, %v198_v24 }
 0x349   :  { %v204_v26 = vadd.f32 1e-05, %v202_v25 }
 0x34a   :  { %v201_v27 = vpop.xlane.xlu1 %200 }
 0x34b   :  { %4302 = vrsqrt.f32 %v204_v26  ;;  %v203_v28 = vmul.f32 0.03125, %v201_v27 }
 0x34d   :  { %v205_v29 = vadd.f32 1e-05, %v203_v28 }
 0x34f   :  { %4304 = vrsqrt.f32 %v205_v29 }
 0x355   :  { %v4303_v32 = vpop.eup %4302 }
 0x356   :  { %v208_v33 = vmul.f32 %v4303_v32, %v192_v7 }
 0x358   :  { %v214_v35 = vmul.f32 %v213_v31, %v208_v33 }
 0x359   :  { %v4305_v36 = vpop.eup %4304 }
 0x35a   :  { %v209_v37 = vmul.f32 %v4305_v36, %v193_v11  ;;  %v220_v38 = vadd.f32 %v219_v34, %v214_v35 }
 0x35c   :  { %v215_v39 = vmul.f32 %v213_v31, %v209_v37  ;;  %3567 = vmatprep.mubr.msk.f32.mxu1 %vm143_vm2, %v220_v38 }
 0x35e   :  { %v221_v40 = vadd.f32 %v219_v34, %v215_v39 }
 0x360   :  { %3568 = vmatmul.mubr.msk.f32.vlgmr.msra.gmra.mrb[4].mxu1 %vm143_vm2, %v221_v40 }
 0x433   :  { %v3569_v45 = vpop.f32.mrb[4].mxu1 }
 0x434   :  { %v4626_v47 = vadd.f32 %v3569_v45, %v237_v43  ;;  %v346_v48 = vpop.f32.mrb[5].mxu1 }
 0x435   :  { %v4628_v49 = vadd.f32 %v346_v48, %v237_v43 }
 0x437   :  { %3574 = vmatprep.mubr.msk.f32.mxu0 %vm361_vm4, %v4628_v49  ;;  %v4634_v50 = vpack.i.bf16 %v4626_v47, %v4628_v49 }
 0x439   :  { %4219 = vrot.lane.b32.xlu0 %v4634_v50, %s4405_s19 }
 0x43d   :  { %4229 = vrot.lane.b32.xlu0 %v4634_v50, %s4406_s20 }
 0x441   :  { %557 = vrot.lane.b32.xlu0 %v4628_v49, %s4407_s21 }
 0x445   :  { %559 = vrot.lane.b32.xlu0 %v4626_v47, %s4407_s21 }
 0x4ab   :  { %v4220_v51 = vpop.permute.xlu0 %4219 }
 0x4ac   :  { %v4222_v52 = vunpack.i.h.bf16 %v4220_v51  ;;  %v4221_v54 = vunpack.i.l.bf16 %v4220_v51 }
 0x4ae   :  { %v3904_v56 = vpack.c.bf16 %v4222_v52, %v4221_v54 }
 0x4af   :  { %v4230_v15 = vpop.permute.xlu0 %4229 }
 0x4b0   :  { %3906 = vmatprep.subr.msk.bf16.mxu0 %vm4646_vm5, %v3904_v56  ;;  %v4232_v17 = vunpack.i.h.bf16 %v4230_v15  ;;  %v4231_v18 = vunpack.i.l.bf16 %v4230_v15 }
 0x4b1   :  { %3909 = vmatpush3.bf16.xpose.msk.msra.mxu0 %vm4646_vm5, %v3904_v56 }
 0x4b2   :  { %v3914_v22 = vpack.c.bf16 %v4232_v17, %v4231_v18 }
 0x4b3   :  { %v558_v27 = vpop.permute.xlu0 %557 }
 0x4b7   :  { %v560_v28 = vpop.permute.xlu0 %559 }
 0x4b8   :  { %3575 = vmatmul.mubr.msk.f32.vlgmr.msra.gmra.mrb[0].mxu0 %vm361_vm4, %v4626_v47 }
 0x58b   :  { %v3576_v60 = vpop.f32.mrb[0].mxu0 }
 0x58c   :  { %v436_v62 = vpop.f32.mrb[1].mxu0  ;;  %v442_v0 = vadd.f32 %v3576_v60, %v4664_v61 }
 0x58d   :  { %v437_v63 = vadd.f32 %v436_v62, %v4659_v58 }
 0x58e   :  { %v449_v2 = vsel %vm445_vm6, %v442_v0, -inf }
 0x58f   :  { %v446_v1 = vsel %vm445_vm6, %v437_v63, -inf }
 0x590   :  { %447 = vmax.xlane.f32.xlu1 %v446_v1 }
 0x594   :  { %450 = vmax.xlane.f32.xlu1 %v449_v2 }
 0x61d   :  { %v448_v3 = vpop.xlane.xlu1 %447 }
 0x61e   :  { %v452_v4 = vsub.f32 %v437_v63, %v448_v3 }
 0x620   :  { %v454_v7 = vmul.f32 1.442695, %v452_v4 }
 0x621   :  { %v451_v5 = vpop.xlane.xlu1 %450 }
 0x622   :  { %v453_v6 = vsub.f32 %v442_v0, %v451_v5 }
 0x624   :  { %v456_v8 = vmul.f32 1.442695, %v453_v6 }
 0x626   :  { %4306 = vpow2.f32 %v456_v8 }
 0x627   :  { %4308 = vpow2.f32 %v454_v7 }
 0x630   :  { %v4307_v9 = vpop.eup %4306 }
 0x631   :  { %v461_v10 = vsel %vm445_vm6, %v4307_v9, 0.0  ;;  %v4309_v11 = vpop.eup %4308 }
 0x632   :  { %462 = vadd.xlane.f32.xlu1 %v461_v10  ;;  %v458_v12 = vsel %vm445_vm6, %v4309_v11, 0.0 }
 0x636   :  { %459 = vadd.xlane.f32.xlu1 %v458_v12 }
 0x647   :  { %4224 = vrot.lane.b32.xlu1 %v4634_v50, %s4408_s26 }
 0x6bf   :  { %v463_v13 = vpop.xlane.xlu1 %462 }
 0x6c0   :  { %4310 = vrcp.f32 %v463_v13 }
 0x6c3   :  { %v460_v14 = vpop.xlane.xlu1 %459 }
 0x6c4   :  { %4312 = vrcp.f32 %v460_v14 }
 0x6c7   :  { %v4225_v16 = vpop.permute.xlu1 %4224 }
 0x6c8   :  { %v4227_v19 = vunpack.i.h.bf16 %v4225_v16  ;;  %v4226_v20 = vunpack.i.l.bf16 %v4225_v16 }
 0x6ca   :  { %v3910_v21 = vpack.c.bf16 %v4227_v19, %v4226_v20  ;;  %v4311_v23 = vpop.eup %4310 }
 0x6cb   :  { %v467_v26 = vmul.f32 %v4311_v23, %v4307_v9 }
 0x6cc   :  { %3911 = vmatprep.subr.bf16.mxu0 %v3910_v21 }
 0x6cd   :  { %3913 = vmatpush3.bf16.msra.mxu0 %v3910_v21 }
 0x6ce   :  { %v4313_v24 = vpop.eup %4312  ;;  %3916 = vmatprep.subr.msk.bf16.mxu0 %vm4646_vm5, %v3914_v22 }
 0x6cf   :  { %v466_v25 = vmul.f32 %v4313_v24, %v4309_v11 }
 0x6d1   :  { %3581 = vmatprep.mubr.msk.f32.mxu0 %vm445_vm6, %v466_v25 }
 0x6d2   :  { %3582 = vmatmul.mubr.msk.f32.vlgmr.msra.gmra.mrb[2].mxu0 %vm445_vm6, %v467_v26 }
 0x6d3   :  { %3588 = vmatprep.mubr.msk.f32.mxu0 %vm361_vm4, %v558_v27 }
 0x6d6   :  { %3919 = vmatpush3.bf16.xpose.msk.msra.mxu0 %vm4646_vm5, %v3914_v22 }
 0x6dd   :  { %3589 = vmatmul.mubr.msk.f32.vlgmr.msra.gmra.mrb[4].mxu0 %vm361_vm4, %v560_v28 }
 0x7a5   :  { %v3583_v29 = vpop.f32.mrb[2].mxu0 }
 0x7a6   :  { %556 = vst.msk [vmem:[#allocation2 + $0x8] sm:$0xff] %vm361_vm4, %v3583_v29  ;;  %v546_v31 = vpop.f32.mrb[3].mxu0 }
 0x7a7   :  { %555 = vst.msk [vmem:[#allocation2] sm:$0xff] %vm361_vm4, %v546_v31 }
 0x7b0   :  { %v3590_v32 = vpop.f32.mrb[4].mxu0 }
 0x7b1   :  { %v645_v33 = vadd.f32 %v3590_v32, %v4664_v61  ;;  %v639_v34 = vpop.f32.mrb[5].mxu0 }
 0x7b2   :  { %v640_v35 = vadd.f32 %v639_v34, %v4659_v58 }
 0x7b3   :  { %v651_v36 = vsel %vm445_vm6, %v645_v33, -inf }
 0x7b4   :  { %652 = vmax.xlane.f32.xlu0 %v651_v36  ;;  %v648_v37 = vsel %vm445_vm6, %v640_v35, -inf }
 0x7b5   :  { %649 = vmax.xlane.f32.xlu1 %v648_v37 }
 0x7c6   :  { %4234 = vrot.lane.b32.xlu1 %v4634_v50, %s4409_s27 }
 0x7ca   :  { %4244 = vrot.lane.b32.xlu1 %v4634_v50, %s4410_s28 }
 0x7ce   :  { %768 = vrot.lane.b32.xlu1 %v4628_v49, %s4411_s29 }
 0x7d2   :  { %770 = vrot.lane.b32.xlu1 %v4626_v47, %s4411_s29 }
 0x7d6   :  { %981 = vrot.lane.b32.xlu1 %v4626_v47, %s4412_s30 }
 0x841   :  { %v653_v38 = vpop.xlane.xlu0 %652 }
 0x842   :  { %v655_v39 = vsub.f32 %v645_v33, %v653_v38  ;;  %v650_v40 = vpop.xlane.xlu1 %649 }
 0x843   :  { %v654_v43 = vsub.f32 %v640_v35, %v650_v40 }
 0x844   :  { %v658_v45 = vmul.f32 1.442695, %v655_v39 }
 0x845   :  { %v656_v48 = vmul.f32 1.442695, %v654_v43 }
 0x846   :  { %4314 = vpow2.f32 %v658_v45  ;;  %v4235_v51 = vpop.permute.xlu1 %4234 }
 0x847   :  { %v4237_v52 = vunpack.i.h.bf16 %v4235_v51  ;;  %v4236_v54 = vunpack.i.l.bf16 %v4235_v51  ;;  %4316 = vpow2.f32 %v656_v48 }
 0x849   :  { %v3920_v56 = vpack.c.bf16 %v4237_v52, %v4236_v54 }
 0x84a   :  { %v4245_v60 = vpop.permute.xlu1 %4244 }
 0x84b   :  { %v4247_v62 = vunpack.i.h.bf16 %v4245_v60  ;;  %v4246_v63 = vunpack.i.l.bf16 %v4245_v60  ;;  %3921 = vmatprep.subr.bf16.mxu0 %v3920_v56 }
 0x84c   :  { %3923 = vmatpush3.bf16.msra.mxu0 %v3920_v56 }
 0x84d   :  { %v3934_v0 = vpack.c.bf16 %v4247_v62, %v4246_v63 }
 0x84e   :  { %v769_v5 = vpop.permute.xlu1 %768 }
 0x84f   :  { %3936 = vmatprep.subr.msk.bf16.mxu1 %vm4646_vm5, %v3934_v0 }
 0x850   :  { %v4315_v47 = vpop.eup %4314  ;;  %3939 = vmatpush3.bf16.xpose.msk.msra.mxu1 %vm4646_vm5, %v3934_v0 }
 0x851   :  { %v663_v1 = vsel %vm445_vm6, %v4315_v47, 0.0  ;;  %v4317_v2 = vpop.eup %4316 }
 0x852   :  { %664 = vadd.xlane.f32.xlu0 %v663_v1  ;;  %v660_v3 = vsel %vm445_vm6, %v4317_v2, 0.0  ;;  %v771_v7 = vpop.permute.xlu1 %770 }
 0x856   :  { %661 = vadd.xlane.f32.xlu0 %v660_v3  ;;  %v982_v13 = vpop.permute.xlu1 %981 }
 0x86c   :  { %4239 = vrot.lane.b32.xlu0 %v4634_v50, %s4413_s10 }
 0x870   :  { %979 = vrot.lane.b32.xlu0 %v4628_v49, %s4412_s30 }
 0x8df   :  { %v665_v4 = vpop.xlane.xlu0 %664 }
 0x8e0   :  { %4318 = vrcp.f32 %v665_v4 }
 0x8e3   :  { %v662_v6 = vpop.xlane.xlu0 %661 }
 0x8e4   :  { %4320 = vrcp.f32 %v662_v6 }
 0x8e7   :  { %v4240_v8 = vpop.permute.xlu0 %4239 }
 0x8e8   :  { %v4242_v9 = vunpack.i.h.bf16 %v4240_v8  ;;  %v4241_v10 = vunpack.i.l.bf16 %v4240_v8 }
 0x8ea   :  { %v3924_v11 = vpack.c.bf16 %v4242_v9, %v4241_v10  ;;  %v4319_v14 = vpop.eup %4318 }
 0x8eb   :  { %v980_v12 = vpop.permute.xlu0 %979  ;;  %v669_v16 = vmul.f32 %v4319_v14, %v4315_v47 }
 0x8ec   :  { %3926 = vmatprep.subr.msk.bf16.mxu0 %vm4646_vm5, %v3924_v11  ;;  %3616 = vmatprep.mubr.msk.f32.mxu1 %vm361_vm4, %v980_v12 }
 0x8ed   :  { %3617 = vmatmul.mubr.msk.f32.vlgmr.msra.gmra.mrb[6].mxu1 %vm361_vm4, %v982_v13 }
 0x8ee   :  { %v4321_v49 = vpop.eup %4320 }
 0x8ef   :  { %v668_v15 = vmul.f32 %v4321_v49, %v4317_v2 }
 0x8f1   :  { %3595 = vmatprep.mubr.msk.f32.mxu0 %vm445_vm6, %v668_v15 }
 0x8f2   :  { %3596 = vmatmul.mubr.msk.f32.vlgmr.msra.gmra.mrb[6].mxu0 %vm445_vm6, %v669_v16 }
 0x8f3   :  { %3929 = vmatpush3.bf16.xpose.msk.msra.mxu0 %vm4646_vm5, %v3924_v11  ;;  %3602 = vmatprep.mubr.msk.f32.mxu0 %vm361_vm4, %v769_v5 }
 0x8fa   :  { %3603 = vmatmul.mubr.msk.f32.vlgmr.msra.gmra.mrb[8].mxu0 %vm361_vm4, %v771_v7 }
 0x9c0   :  { %v3618_v17 = vpop.f32.mrb[6].mxu1 }
 0x9c1   :  { %v1061_v18 = vpop.f32.mrb[7].mxu1  ;;  %v1067_v28 = vadd.f32 %v3618_v17, %v4664_v61 }
 0x9c2   :  { %v1062_v26 = vadd.f32 %v1061_v18, %v4659_v58 }
 0x9c3   :  { %v1073_v31 = vsel %vm445_vm6, %v1067_v28, -inf }
 0x9c4   :  { %v1070_v29 = vsel %vm445_vm6, %v1062_v26, -inf }
 0x9c5   :  { %v3597_v19 = vpop.f32.mrb[6].mxu0 }
 0x9c6   :  { %v748_v20 = vpop.f32.mrb[7].mxu0 }
 0x9cd   :  { %v3604_v21 = vpop.f32.mrb[8].mxu0 }
 0x9ce   :  { %v856_v22 = vadd.f32 %v3604_v21, %v4664_v61  ;;  %v850_v23 = vpop.f32.mrb[9].mxu0  ;;  %v1193_v21 = vld [vmem:[%s5361_s5 + $0x8] sm:$0xff] }
 0x9cf   :  { %v851_v24 = vadd.f32 %v850_v23, %v4659_v58  ;;  %v1194_v23 = vld [vmem:[%s5361_s5 + $0x10] sm:$0xff] }
 0x9d0   :  { %v862_v25 = vsel %vm445_vm6, %v856_v22, -inf }
 0x9d1   :  { %863 = vmax.xlane.f32.xlu1 %v862_v25  ;;  %v859_v27 = vsel %vm445_vm6, %v851_v24, -inf }
 0x9d2   :  { %860 = vmax.xlane.f32.xlu0 %v859_v27 }
 0x9d6   :  { %1071 = vmax.xlane.f32.xlu0 %v1070_v29 }
 0x9da   :  { %1074 = vmax.xlane.f32.xlu0 %v1073_v31 }
 0xa5e   :  { %v864_v34 = vpop.xlane.xlu1 %863 }
 0xa5f   :  { %v861_v32 = vpop.xlane.xlu0 %860  ;;  %v866_v37 = vsub.f32 %v856_v22, %v864_v34 }
 0xa60   :  { %v865_v33 = vsub.f32 %v851_v24, %v861_v32  ;;  %v1195_v24 = vld [vmem:[%s5361_s5 + $0x18] sm:$0xff] }
 0xa61   :  { %v869_v45 = vmul.f32 1.442695, %v866_v37  ;;  %v3950_v25 = vpack.c.bf16 %v1195_v24, %v1194_v23  ;;  %v4773_v37 = vsub.s32 3, %v4519_v42  ;;  %v1350_v23 = vld [vmem:[%s5362_s6 + $0x78] sm:$0xff] }
 0xa62   :  { %v867_v38 = vmul.f32 1.442695, %v865_v33 }
 0xa63   :  { %v1072_v35 = vpop.xlane.xlu0 %1071 }
 0xa64   :  { %v1076_v36 = vsub.f32 %v1062_v26, %v1072_v35 }
 0xa66   :  { %v1078_v39 = vmul.f32 1.442695, %v1076_v36 }
 0xa67   :  { %v1075_v40 = vpop.xlane.xlu0 %1074 }
 0xa68   :  { %4322 = vpow2.f32 %v1078_v39  ;;  %v1077_v43 = vsub.f32 %v1067_v28, %v1075_v40 }
 0xa69   :  { %4324 = vpow2.f32 %v867_v38  ;;  %v1294_v38 = vrot.slane %v4613_v30, %v4773_v37 }
 0xa6a   :  { %v1080_v48 = vmul.f32 1.442695, %v1077_v43 }
 0xa6c   :  { %4326 = vpow2.f32 %v1080_v48 }
 0xa6d   :  { %4328 = vpow2.f32 %v869_v45 }
 0xa72   :  { %v4323_v51 = vpop.eup %4322 }
 0xa73   :  { %v1082_v52 = vsel %vm445_vm6, %v4323_v51, 0.0  ;;  %v4325_v54 = vpop.eup %4324 }
 0xa74   :  { %1083 = vadd.xlane.f32.xlu0 %v1082_v52  ;;  %v871_v60 = vsel %vm445_vm6, %v4325_v54, 0.0 }
 0xa76   :  { %v4327_v56 = vpop.eup %4326 }
 0xa77   :  { %v1085_v62 = vsel %vm445_vm6, %v4327_v56, 0.0  ;;  %v4329_v63 = vpop.eup %4328 }
 0xa78   :  { %872 = vadd.xlane.f32.xlu0 %v871_v60  ;;  %1086 = vadd.xlane.f32.xlu1 %v1085_v62  ;;  %v874_v0 = vsel %vm445_vm6, %v4329_v63, 0.0  ;;  %v1338_v62 = vld [vmem:[%s5362_s6 + $0x18] sm:$0xff] }
 0xa7c   :  { %875 = vadd.xlane.f32.xlu1 %v874_v0  ;;  %v1339_v0 = vld [vmem:[%s5362_s6 + $0x20] sm:$0xff] }
 0xa8d   :  { %4254 = vrot.lane.b32.xlu1 %v4634_v50, %s4414_s11 }
 0xa8e   :  { %4249 = vrot.lane.b32.xlu0 %v4634_v50, %s4415_s12 }
 0xa91   :  { %759 = vrot.lane.b32.xlu1 %v748_v20, %s4416_s1  ;;  %v1192_v20 = vld [vmem:[%s5361_s5] sm:$0xff] }
 0xa92   :  { %v3944_v22 = vpack.c.bf16 %v1193_v21, %v1192_v20  ;;  %v1348_v20 = vld [vmem:[%s5362_s6 + $0x68] sm:$0xff] }
 0xa95   :  { %761 = vrot.lane.b32.xlu1 %v3597_v19, %s4416_s1 }
 0xb01   :  { %v1084_v47 = vpop.xlane.xlu0 %1083 }
 0xb05   :  { %v1087_v1 = vpop.xlane.xlu1 %1086  ;;  %v873_v2 = vpop.xlane.xlu0 %872 }
 0xb06   :  { %4330 = vrcp.f32 %v873_v2  ;;  %v1341_v2 = vld [vmem:[%s5362_s6 + $0x30] sm:$0xff] }
 0xb07   :  { %4332 = vrcp.f32 %v1084_v47  ;;  %v1340_v47 = vld [vmem:[%s5362_s6 + $0x28] sm:$0xff] }
 0xb09   :  { %v876_v3 = vpop.xlane.xlu1 %875  ;;  %v4250_v4 = vpop.permute.xlu0 %4249 }
 0xb0a   :  { %4334 = vrcp.f32 %v876_v3  ;;  %v4252_v5 = vunpack.i.h.bf16 %v4250_v4  ;;  %v4251_v6 = vunpack.i.l.bf16 %v4250_v4  ;;  %v1342_v3 = vld [vmem:[%s5362_s6 + $0x38] sm:$0xff] }
 0xb0b   :  { %4336 = vrcp.f32 %v1087_v1  ;;  %v3968_v1 = vpack.c.bf16 %v1340_v47, %v1339_v0  ;;  %v3974_v4 = vpack.c.bf16 %v1342_v3, %v1341_v2  ;;  %v1353_v0 = vsub.s32 6, %v4519_v42 }
 0xb0c   :  { %v3930_v7 = vpack.c.bf16 %v4252_v5, %v4251_v6  ;;  %v1343_v5 = vld [vmem:[%s5362_s6 + $0x40] sm:$0xff]  ;;  %v1344_v6 = vld [vmem:[%s5362_s6 + $0x48] sm:$0xff] }
 0xb0d   :  { %v4255_v8 = vpop.permute.xlu1 %4254  ;;  %v1354_v47 = vrot.slane %v4613_v30, %v1353_v0 }
 0xb0e   :  { %v4257_v9 = vunpack.i.h.bf16 %v4255_v8  ;;  %v4256_v50 = vunpack.i.l.bf16 %v4255_v8  ;;  %3931 = vmatprep.subr.bf16.mxu0 %v3930_v7 }
 0xb0f   :  { %3933 = vmatpush3.bf16.msra.mxu0 %v3930_v7  ;;  %v3980_v7 = vpack.c.bf16 %v1344_v6, %v1343_v5 }
 0xb10   :  { %v3940_v10 = vpack.c.bf16 %v4257_v9, %v4256_v50  ;;  %v4331_v11 = vpop.eup %4330 }
 0xb11   :  { %v760_v12 = vpop.permute.xlu1 %759  ;;  %v879_v13 = vmul.f32 %v4331_v11, %v4325_v54  ;;  %v4333_v14 = vpop.eup %4332 }
 0xb12   :  { %766 = vst.msk [vmem:[#allocation2] sm:$0xff] %vm765_vm7, %v760_v12  ;;  %3941 = vmatprep.subr.bf16.mxu0 %v3940_v10  ;;  %v1090_v18 = vmul.f32 %v4333_v14, %v4323_v51 }
 0xb13   :  { %3609 = vmatprep.mubr.msk.f32.mxu0 %vm445_vm6, %v879_v13 }
 0xb14   :  { %v4335_v49 = vpop.eup %4334 }
 0xb15   :  { %v880_v15 = vmul.f32 %v4335_v49, %v4329_v63  ;;  %v762_v16 = vpop.permute.xlu1 %761  ;;  %v4337_v17 = vpop.eup %4336 }
 0xb16   :  { %767 = vst.msk [vmem:[#allocation2 + $0x8] sm:$0xff] %vm765_vm7, %v762_v16  ;;  %v1091_v19 = vmul.f32 %v4337_v17, %v4327_v56  ;;  %v1335_v56 = vld [vmem:[%s5362_s6] sm:$0xff]  ;;  %v1345_v16 = vld [vmem:[%s5362_s6 + $0x50] sm:$0xff]  ;;  %v1346_v17 = vld [vmem:[%s5362_s6 + $0x58] sm:$0xff] }
 0xb17   :  { %3610 = vmatmul.mubr.msk.f32.vlgmr.msra.gmra.mrb[10].mxu0 %vm445_vm6, %v880_v15 }
 0xb18   :  { %3943 = vmatpush3.bf16.msra.mxu0 %v3940_v10  ;;  %3623 = vmatprep.mubr.msk.f32.mxu0 %vm445_vm6, %v1090_v18  ;;  %v3986_v18 = vpack.c.bf16 %v1346_v17, %v1345_v16 }
 0xb19   :  { %3946 = vmatprep.subr.msk.bf16.mxu0 %vm4542_vm3, %v3944_v22 }
 0xb1b   :  { %3624 = vmatmul.mubr.msk.f32.vlgmr.msra.gmra.mrb[12].mxu0 %vm445_vm6, %v1091_v19  ;;  %v1347_v19 = vld [vmem:[%s5362_s6 + $0x60] sm:$0xff] }
 0xb1c   :  { %v3992_v21 = vpack.c.bf16 %v1348_v20, %v1347_v19 }
 0xb21   :  { %3949 = vmatpush3.bf16.xpose.msk.msra.mxu0 %vm4542_vm3, %v3944_v22  ;;  %v1349_v22 = vld [vmem:[%s5362_s6 + $0x70] sm:$0xff] }
 0xb22   :  { %3952 = vmatprep.subr.msk.bf16.mxu0 %vm4542_vm3, %v3950_v25  ;;  %v3998_v24 = vpack.c.bf16 %v1350_v23, %v1349_v22 }
 0xb29   :  { %3955 = vmatpush3.bf16.xpose.msk.msra.mxu0 %vm4542_vm3, %v3950_v25 }
 0xbea   :  { %v3611_v26 = vpop.f32.mrb[10].mxu0 }
 0xbeb   :  { %972 = vrot.lane.b32.xlu1 %v3611_v26, %s4417_s23  ;;  %v959_v27 = vpop.f32.mrb[11].mxu0 }
 0xbec   :  { %970 = vrot.lane.b32.xlu0 %v959_v27, %s4417_s23 }
 0xbee   :  { %v3625_v28 = vpop.f32.mrb[12].mxu0 }
 0xbef   :  { %1183 = vrot.lane.b32.xlu1 %v3625_v28, %s4418_s24  ;;  %v1170_v29 = vpop.f32.mrb[13].mxu0 }
 0xbf0   :  { %1181 = vrot.lane.b32.xlu0 %v1170_v29, %s4418_s24 }
 0xc5d   :  { %v973_v31 = vpop.permute.xlu1 %972 }
 0xc5e   :  { %978 = vst.msk [vmem:[#allocation2 + $0x8] sm:$0xff] %vm976_vm8, %v973_v31  ;;  %v971_v32 = vpop.permute.xlu0 %970 }
 0xc5f   :  { %977 = vst.msk [vmem:[#allocation2] sm:$0xff] %vm976_vm8, %v971_v32  ;;  %v4872_v32 = vsub.s32 4, %v4519_v42 }
 0xc61   :  { %v1184_v33 = vpop.permute.xlu1 %1183 }
 0xc62   :  { %1189 = vst.msk [vmem:[#allocation2 + $0x8] sm:$0xff] %vm1187_vm9, %v1184_v33  ;;  %v1182_v34 = vpop.permute.xlu0 %1181  ;;  %v1331_v33 = vsub.s32 5, %v4519_v42 }
 0xc63   :  { %1188 = vst.msk [vmem:[#allocation2] sm:$0xff] %vm1187_vm9, %v1182_v34  ;;  %v1326_v34 = vrot.slane %v4613_v30, %v4872_v32 }
 0xc69   :  { %v1191_v36 = vld [vmem:[#allocation2 + $0x8] sm:$0xff] }
 0xc6a   :  { %v1190_v35 = vld [vmem:[#allocation2] sm:$0xff] }
 0xc6b   :  { %3634 = vmatprep.mubr.msk.f32.mxu0 %vm143_vm2, %v1190_v35 }
 0xc6c   :  { %3635 = vmatmul.mubr.msk.f32.vlgmr.msra.gmra.mrb[14].mxu0 %vm143_vm2, %v1191_v36 }
 0xd3f   :  { %v3636_v39 = vpop.f32.mrb[14].mxu0 }
 0xd40   :  { %v1290_v40 = vadd.f32 %v3636_v39, %v4536_v57  ;;  %v1280_v43 = vpop.f32.mrb[15].mxu0  ;;  %v1337_v57 = vld [vmem:[%s5362_s6 + $0x10] sm:$0xff] }
 0xd41   :  { %v1289_v45 = vadd.f32 %v1280_v43, %v4532_v53  ;;  %v1336_v53 = vld [vmem:[%s5362_s6 + $0x8] sm:$0xff]  ;;  %v3962_v63 = vpack.c.bf16 %v1338_v62, %v1337_v57  ;;  %v1503_v62 = vld [vmem:[%s5363_s7 + $0x18] sm:$0xff] }
 0xd42   :  { %v4779_v48 = vadd.f32 %v1294_v38, %v1290_v40  ;;  %v3956_v60 = vpack.c.bf16 %v1336_v53, %v1335_v56  ;;  %v1500_v56 = vld [vmem:[%s5363_s7] sm:$0xff]  ;;  %v1501_v53 = vld [vmem:[%s5363_s7 + $0x8] sm:$0xff] }
 0xd43   :  { %v4781_v51 = vadd.f32 %v1294_v38, %v1289_v45  ;;  %v1332_v38 = vrot.slane %v4613_v30, %v1331_v33  ;;  %v4004_v57 = vpack.c.bf16 %v1501_v53, %v1500_v56 }
 0xd44   :  { %v1300_v52 = vsel %vm143_vm2, %v4779_v48, 0.0  ;;  %3958 = vmatprep.subr.msk.bf16.mxu1 %vm4542_vm3, %v3956_v60 }
 0xd45   :  { %1301 = vadd.xlane.f32.xlu1 %v1300_v52  ;;  %v1297_v54 = vsel %vm143_vm2, %v4781_v51, 0.0  ;;  %3961 = vmatpush3.bf16.xpose.msk.msra.mxu1 %vm4542_vm3, %v3956_v60  ;;  %v1502_v60 = vld [vmem:[%s5363_s7 + $0x10] sm:$0xff] }
 0xd46   :  { %1298 = vadd.xlane.f32.xlu0 %v1297_v54  ;;  %3964 = vmatprep.subr.msk.bf16.mxu1 %vm4542_vm3, %v3962_v63 }
 0xd47   :  { %4005 = vmatprep.subr.bf16.mxu0 %v4004_v57 }
 0xd48   :  { %4007 = vmatpush3.bf16.xpose.msra.mxu0 %v4004_v57 }
 0xd4d   :  { %3967 = vmatpush3.bf16.xpose.msk.msra.mxu1 %vm4542_vm3, %v3962_v63  ;;  %v4008_v63 = vpack.c.bf16 %v1503_v62, %v1502_v60  ;;  %v3263_v60 = vld [vmem:[%s5359_s4 + $0xa0] sm:$0xff]  ;;  %v3264_v62 = vld [vmem:[%s5359_s4 + $0xa8] sm:$0xff] }
 0xd4e   :  { %3970 = vmatprep.subr.msk.bf16.mxu1 %vm4542_vm3, %v3968_v1 }
 0xd4f   :  { %4009 = vmatprep.subr.bf16.mxu0 %v4008_v63 }
 0xd50   :  { %4011 = vmatpush3.bf16.xpose.msra.mxu0 %v4008_v63  ;;  %v4036_v63 = vpack.c.bf16 %v3264_v62, %v3263_v60 }
 0xd55   :  { %3973 = vmatpush3.bf16.xpose.msk.msra.mxu1 %vm4542_vm3, %v3968_v1 }
 0xd56   :  { %3976 = vmatprep.subr.msk.bf16.mxu1 %vm4542_vm3, %v3974_v4 }
 0xd5d   :  { %3979 = vmatpush3.bf16.xpose.msk.msra.mxu1 %vm4542_vm3, %v3974_v4 }
 0xd5e   :  { %3982 = vmatprep.subr.msk.bf16.mxu1 %vm4542_vm3, %v3980_v7 }
 0xd65   :  { %3985 = vmatpush3.bf16.xpose.msk.msra.mxu1 %vm4542_vm3, %v3980_v7 }
 0xd66   :  { %3988 = vmatprep.subr.msk.bf16.mxu1 %vm4542_vm3, %v3986_v18 }
 0xd6d   :  { %3991 = vmatpush3.bf16.xpose.msk.msra.mxu1 %vm4542_vm3, %v3986_v18 }
 0xd6e   :  { %3994 = vmatprep.subr.msk.bf16.mxu1 %vm4542_vm3, %v3992_v21 }
 0xd75   :  { %3997 = vmatpush3.bf16.xpose.msk.msra.mxu1 %vm4542_vm3, %v3992_v21 }
 0xd76   :  { %4000 = vmatprep.subr.msk.bf16.mxu1 %vm4542_vm3, %v3998_v24 }
 0xd7d   :  { %4003 = vmatpush3.bf16.xpose.msk.msra.mxu1 %vm4542_vm3, %v3998_v24 }
 0xdd2   :  { %v1302_v8 = vpop.xlane.xlu1 %1301 }
 0xdd3   :  { %v1304_v9 = vmul.f32 0.03125, %v1302_v8  ;;  %v1299_v50 = vpop.xlane.xlu0 %1298 }
 0xdd4   :  { %v1303_v10 = vmul.f32 0.03125, %v1299_v50 }
 0xdd5   :  { %v1306_v11 = vsub.f32 %v4779_v48, %v1304_v9 }
 0xdd6   :  { %v1305_v12 = vsub.f32 %v4781_v51, %v1303_v10 }
 0xdd7   :  { %v1308_v49 = vmul.f32 %v1306_v11, %v1306_v11 }
 0xdd8   :  { %v1307_v13 = vmul.f32 %v1305_v12, %v1305_v12 }
 0xdd9   :  { %v1312_v15 = vsel %vm143_vm2, %v1308_v49, 0.0 }
 0xdda   :  { %v1309_v14 = vsel %vm143_vm2, %v1307_v13, 0.0 }
 0xddb   :  { %1310 = vadd.xlane.f32.xlu0 %v1309_v14 }
 0xddf   :  { %1313 = vadd.xlane.f32.xlu0 %v1312_v15  ;;  %v1583_v15 = vsub.s32 7, %v4519_v42  ;;  %v3029_v42 = vld [vmem:[%s5364_s8] sm:$0xff] }
 0xde1   :  { %v1584_v16 = vrot.slane %v4613_v30, %v1583_v15  ;;  %v3255_v30 = vld [vmem:[%s5359_s4 + $0x60] sm:$0xff] }
 0xe68   :  { %v1311_v25 = vpop.xlane.xlu0 %1310 }
 0xe69   :  { %v1315_v26 = vmul.f32 0.03125, %v1311_v25 }
 0xe6b   :  { %v1317_v27 = vadd.f32 1e-05, %v1315_v26  ;;  %v3258_v26 = vld [vmem:[%s5359_s4 + $0x78] sm:$0xff] }
 0xe6c   :  { %v1314_v28 = vpop.xlane.xlu0 %1313 }
 0xe6d   :  { %4338 = vrsqrt.f32 %v1317_v27  ;;  %v1316_v29 = vmul.f32 0.03125, %v1314_v28  ;;  %v3259_v28 = vld [vmem:[%s5359_s4 + $0x80] sm:$0xff] }
 0xe6f   :  { %v1318_v31 = vadd.f32 1e-05, %v1316_v29  ;;  %v3260_v29 = vld [vmem:[%s5359_s4 + $0x88] sm:$0xff] }
 0xe71   :  { %4340 = vrsqrt.f32 %v1318_v31  ;;  %v4024_v31 = vpack.c.bf16 %v3260_v29, %v3259_v28 }
 0xe77   :  { %v4339_v35 = vpop.eup %4338 }
 0xe78   :  { %v1321_v36 = vmul.f32 %v4339_v35, %v1305_v12  ;;  %v3262_v35 = vld [vmem:[%s5359_s4 + $0x98] sm:$0xff] }
 0xe7a   :  { %v1327_v39 = vmul.f32 %v1326_v34, %v1321_v36 }
 0xe7b   :  { %v4341_v40 = vpop.eup %4340 }
 0xe7c   :  { %v1322_v43 = vmul.f32 %v4341_v40, %v1306_v11  ;;  %v1333_v45 = vadd.f32 %v1332_v38, %v1327_v39 }
 0xe7e   :  { %v1328_v52 = vmul.f32 %v1326_v34, %v1322_v43  ;;  %3669 = vmatprep.mubr.msk.f32.mxu1 %vm143_vm2, %v1333_v45  ;;  %v3261_v34 = vld [vmem:[%s5359_s4 + $0x90] sm:$0xff] }
 0xe7f   :  { %v4030_v36 = vpack.c.bf16 %v3262_v35, %v3261_v34 }
 0xe80   :  { %v1334_v54 = vadd.f32 %v1332_v38, %v1328_v52 }
 0xe82   :  { %3670 = vmatmul.mubr.msk.f32.vlgmr.msra.gmra.mrb[8].mxu1 %vm143_vm2, %v1334_v54 }
 0xf55   :  { %v3671_v1 = vpop.f32.mrb[8].mxu1 }
 0xf56   :  { %v1481_v2 = vadd.f32 %v3671_v1, %v1354_v47  ;;  %v1475_v3 = vpop.f32.mrb[9].mxu1  ;;  %v3266_v1 = vld [vmem:[%s5359_s4 + $0xb8] sm:$0xff] }
 0xf57   :  { %v1476_v4 = vadd.f32 %v1475_v3, %v1354_v47  ;;  %v3265_v47 = vld [vmem:[%s5359_s4 + $0xb0] sm:$0xff] }
 0xf58   :  { %v3253_v5 = vmul.f32 -1.702, %v1481_v2 }
 0xf59   :  { %v3252_v6 = vmul.f32 -1.702, %v1476_v4 }
 0xf5a   :  { %v1490_v7 = vmul.f32 1.442695, %v3253_v5 }
 0xf5b   :  { %v1488_v8 = vmul.f32 1.442695, %v3252_v6 }
 0xf5c   :  { %4342 = vpow2.f32 %v1490_v7 }
 0xf5d   :  { %4344 = vpow2.f32 %v1488_v8 }
 0xf66   :  { %v4343_v9 = vpop.eup %4342 }
 0xf67   :  { %v4345_v50 = vpop.eup %4344  ;;  %v1493_v10 = vadd.f32 1.0, %v4343_v9  ;;  %v4979_v9 = vld [vmem:[%s5360_s3 + $0x8] sm:$0xff] }
 0xf68   :  { %v1492_v11 = vadd.f32 1.0, %v4345_v50  ;;  %v1618_v50 = vrot.slane %v4979_v9, %v4522_v44 }
 0xf69   :  { %4346 = vrcp.f32 %v1493_v10 }
 0xf6a   :  { %4348 = vrcp.f32 %v1492_v11 }
 0xf73   :  { %v4347_v12 = vpop.eup %4346 }
 0xf74   :  { %v4349_v13 = vpop.eup %4348  ;;  %v1499_v49 = vmul.f32 %v4347_v12, %v1481_v2  ;;  %v4042_v2 = vpack.c.bf16 %v3266_v1, %v3265_v47 }
 0xf75   :  { %v1498_v14 = vmul.f32 %v4349_v13, %v1476_v4 }
 0xf77   :  { %3680 = vmatprep.mubr.f32.mxu0 %v1498_v14  ;;  %v1624_v14 = vrot.slane %v4979_v9, %v4528_v46 }
 0xf78   :  { %3681 = vmatmul.mubr.f32.vlgmr.msra.gmra.mrb[16].mxu0 %v1499_v49 }
0x104b   :  { %v3682_v17 = vpop.f32.mrb[16].mxu0 }
0x104c   :  { %v1580_v18 = vadd.f32 %v3682_v17, %v4779_v48  ;;  %v1570_v19 = vpop.f32.mrb[17].mxu0  ;;  %v3256_v48 = vld [vmem:[%s5359_s4 + $0x68] sm:$0xff] }
0x104d   :  { %v1579_v20 = vadd.f32 %v1570_v19, %v4781_v51  ;;  %v3257_v51 = vld [vmem:[%s5359_s4 + $0x70] sm:$0xff]  ;;  %v4012_v25 = vpack.c.bf16 %v3256_v48, %v3255_v30  ;;  %v1643_v19 = vrot.slane %v4979_v9, %v4622_v41 }
0x104e   :  { %v4904_v21 = vadd.f32 %v1584_v16, %v1580_v18  ;;  %v4018_v27 = vpack.c.bf16 %v3258_v26, %v3257_v51 }
0x104f   :  { %v4906_v22 = vadd.f32 %v1584_v16, %v1579_v20  ;;  %4014 = vmatprep.subr.msk.bf16.mxu0 %vm4542_vm3, %v4012_v25 }
0x1050   :  { %v1592_v23 = vsel %vm143_vm2, %v4904_v21, 0.0  ;;  %4017 = vmatpush3.bf16.xpose.msk.msra.mxu0 %vm4542_vm3, %v4012_v25 }
0x1051   :  { %1593 = vadd.xlane.f32.xlu1 %v1592_v23  ;;  %v1589_v24 = vsel %vm143_vm2, %v4906_v22, 0.0  ;;  %4020 = vmatprep.subr.msk.bf16.mxu0 %vm4542_vm3, %v4018_v27 }
0x1052   :  { %1590 = vadd.xlane.f32.xlu0 %v1589_v24 }
0x1058   :  { %4023 = vmatpush3.bf16.xpose.msk.msra.mxu0 %vm4542_vm3, %v4018_v27 }
0x1059   :  { %4026 = vmatprep.subr.msk.bf16.mxu0 %vm4542_vm3, %v4024_v31 }
0x1060   :  { %4029 = vmatpush3.bf16.xpose.msk.msra.mxu0 %vm4542_vm3, %v4024_v31 }
0x1061   :  { %4032 = vmatprep.subr.msk.bf16.mxu0 %vm4542_vm3, %v4030_v36 }
0x1068   :  { %4035 = vmatpush3.bf16.xpose.msk.msra.mxu0 %vm4542_vm3, %v4030_v36 }
0x1069   :  { %4038 = vmatprep.subr.msk.bf16.mxu0 %vm4542_vm3, %v4036_v63 }
0x1070   :  { %4041 = vmatpush3.bf16.xpose.msk.msra.mxu0 %vm4542_vm3, %v4036_v63 }
0x1071   :  { %4044 = vmatprep.subr.msk.bf16.mxu0 %vm4542_vm3, %v4042_v2 }
0x1078   :  { %4047 = vmatpush3.bf16.xpose.msk.msra.mxu0 %vm4542_vm3, %v4042_v2 }
0x10de   :  { %v1594_v38 = vpop.xlane.xlu1 %1593 }
0x10df   :  { %v1596_v39 = vmul.f32 0.03125, %v1594_v38  ;;  %v1591_v40 = vpop.xlane.xlu0 %1590 }
0x10e0   :  { %v1595_v43 = vmul.f32 0.03125, %v1591_v40 }
0x10e1   :  { %v1598_v45 = vsub.f32 %v4904_v21, %v1596_v39 }
0x10e2   :  { %v1597_v52 = vsub.f32 %v4906_v22, %v1595_v43 }
0x10e3   :  { %v1600_v54 = vmul.f32 %v1598_v45, %v1598_v45 }
0x10e4   :  { %v1599_v56 = vmul.f32 %v1597_v52, %v1597_v52 }
0x10e5   :  { %v1604_v53 = vsel %vm143_vm2, %v1600_v54, 0.0 }
0x10e6   :  { %1605 = vadd.xlane.f32.xlu1 %v1604_v53  ;;  %v1601_v57 = vsel %vm143_vm2, %v1599_v56, 0.0 }
0x10e7   :  { %1602 = vadd.xlane.f32.xlu0 %v1601_v57 }
0x1173   :  { %v1606_v3 = vpop.xlane.xlu1 %1605 }
0x1174   :  { %v1608_v4 = vmul.f32 0.03125, %v1606_v3  ;;  %v1603_v5 = vpop.xlane.xlu0 %1602 }
0x1175   :  { %v1607_v6 = vmul.f32 0.03125, %v1603_v5 }
0x1176   :  { %v1610_v7 = vadd.f32 1e-05, %v1608_v4 }
0x1177   :  { %v1609_v8 = vadd.f32 1e-05, %v1607_v6 }
0x1178   :  { %4350 = vrsqrt.f32 %v1610_v7 }
0x1179   :  { %4352 = vrsqrt.f32 %v1609_v8 }
0x1182   :  { %v4351_v10 = vpop.eup %4350 }
0x1183   :  { %v4353_v11 = vpop.eup %4352  ;;  %v1614_v12 = vmul.f32 %v4351_v10, %v1598_v45 }
0x1184   :  { %v1613_v13 = vmul.f32 %v4353_v11, %v1597_v52 }
0x1185   :  { %v1620_v49 = vmul.f32 %v1618_v50, %v1614_v12  ;;  %v5034_v12 = vld [vmem:[%s5358_s2 + $0x10] sm:$0xff] }
0x1186   :  { %v1619_v16 = vmul.f32 %v1618_v50, %v1613_v13 }
0x1187   :  { %v1626_v18 = vadd.f32 %v1624_v14, %v1620_v49  ;;  %v5040_v49 = vld [vmem:[%s5358_s2 + $0x8] sm:$0xff] }
0x1188   :  { %v1625_v17 = vadd.f32 %v1624_v14, %v1619_v16 }
0x118a   :  { %3707 = vmatprep.mubr.msk.f32.mxu0 %vm143_vm2, %v1625_v17 }
0x118b   :  { %3708 = vmatmul.mubr.msk.f32.vlgmr.msra.gmra.mrb[18].mxu0 %vm143_vm2, %v1626_v18 }
0x125e   :  { %v3709_v20 = vpop.f32.mrb[18].mxu0 }
0x125f   :  { %v4989_v44 = vadd.f32 %v3709_v20, %v1643_v19  ;;  %v1752_v23 = vpop.f32.mrb[19].mxu0 }
0x1260   :  { %v4991_v24 = vadd.f32 %v1752_v23, %v1643_v19 }
0x1262   :  { %3714 = vmatprep.mubr.msk.f32.mxu1 %vm361_vm4, %v4991_v24  ;;  %v4997_v46 = vpack.i.bf16 %v4989_v44, %v4991_v24 }
0x1264   :  { %4259 = vrot.lane.b32.xlu0 %v4997_v46, %s4405_s19 }
0x1268   :  { %4269 = vrot.lane.b32.xlu0 %v4997_v46, %s4406_s20 }
0x126c   :  { %1961 = vrot.lane.b32.xlu0 %v4991_v24, %s4407_s21 }
0x1270   :  { %1963 = vrot.lane.b32.xlu0 %v4989_v44, %s4407_s21 }
0x12d6   :  { %v4260_v30 = vpop.permute.xlu0 %4259 }
0x12d7   :  { %v4262_v48 = vunpack.i.h.bf16 %v4260_v30  ;;  %v4261_v51 = vunpack.i.l.bf16 %v4260_v30 }
0x12d9   :  { %v4048_v25 = vpack.c.bf16 %v4262_v48, %v4261_v51 }
0x12da   :  { %v4270_v53 = vpop.permute.xlu0 %4269 }
0x12db   :  { %4050 = vmatprep.subr.msk.bf16.mxu1 %vm4646_vm5, %v4048_v25  ;;  %v4272_v60 = vunpack.i.h.bf16 %v4270_v53  ;;  %v4271_v62 = vunpack.i.l.bf16 %v4270_v53 }
0x12dc   :  { %4053 = vmatpush3.bf16.xpose.msk.msra.mxu1 %vm4646_vm5, %v4048_v25 }
0x12dd   :  { %v4058_v2 = vpack.c.bf16 %v4272_v60, %v4271_v62 }
0x12de   :  { %v1962_v7 = vpop.permute.xlu0 %1961 }
0x12e2   :  { %v1964_v8 = vpop.permute.xlu0 %1963 }
0x12e3   :  { %3715 = vmatmul.mubr.msk.f32.vlgmr.msra.gmra.mrb[10].mxu1 %vm361_vm4, %v4989_v44 }
0x13b6   :  { %v3716_v26 = vpop.f32.mrb[10].mxu1 }
0x13b7   :  { %v1841_v27 = vpop.f32.mrb[11].mxu1  ;;  %v1847_v29 = vadd.f32 %v3716_v26, %v4664_v61 }
0x13b8   :  { %v1842_v28 = vadd.f32 %v1841_v27, %v4659_v58 }
0x13b9   :  { %v1853_v34 = vsel %vm445_vm6, %v1847_v29, -inf }
0x13ba   :  { %v1850_v31 = vsel %vm445_vm6, %v1842_v28, -inf }
0x13bb   :  { %1851 = vmax.xlane.f32.xlu1 %v1850_v31 }
0x13bf   :  { %1854 = vmax.xlane.f32.xlu1 %v1853_v34 }
0x1448   :  { %v1852_v35 = vpop.xlane.xlu1 %1851 }
0x1449   :  { %v1856_v36 = vsub.f32 %v1842_v28, %v1852_v35 }
0x144b   :  { %v1858_v40 = vmul.f32 1.442695, %v1856_v36 }
0x144c   :  { %v1855_v38 = vpop.xlane.xlu1 %1854 }
0x144d   :  { %v1857_v39 = vsub.f32 %v1847_v29, %v1855_v38 }
0x144f   :  { %v1860_v43 = vmul.f32 1.442695, %v1857_v39 }
0x1451   :  { %4354 = vpow2.f32 %v1860_v43 }
0x1452   :  { %4356 = vpow2.f32 %v1858_v40 }
0x145b   :  { %v4355_v45 = vpop.eup %4354 }
0x145c   :  { %v1865_v52 = vsel %vm445_vm6, %v4355_v45, 0.0  ;;  %v4357_v58 = vpop.eup %4356 }
0x145d   :  { %1866 = vadd.xlane.f32.xlu1 %v1865_v52  ;;  %v1862_v61 = vsel %vm445_vm6, %v4357_v58, 0.0 }
0x1461   :  { %1863 = vadd.xlane.f32.xlu1 %v1862_v61 }
0x1472   :  { %4264 = vrot.lane.b32.xlu1 %v4997_v46, %s4408_s26 }
0x14ea   :  { %v1867_v54 = vpop.xlane.xlu1 %1866 }
0x14eb   :  { %4358 = vrcp.f32 %v1867_v54 }
0x14ee   :  { %v1864_v56 = vpop.xlane.xlu1 %1863 }
0x14ef   :  { %4360 = vrcp.f32 %v1864_v56 }
0x14f2   :  { %v4265_v57 = vpop.permute.xlu1 %4264 }
0x14f3   :  { %v4267_v63 = vunpack.i.h.bf16 %v4265_v57  ;;  %v4266_v47 = vunpack.i.l.bf16 %v4265_v57 }
0x14f5   :  { %v4054_v1 = vpack.c.bf16 %v4267_v63, %v4266_v47  ;;  %v4359_v3 = vpop.eup %4358 }
0x14f6   :  { %v1871_v6 = vmul.f32 %v4359_v3, %v4355_v45 }
0x14f7   :  { %4055 = vmatprep.subr.bf16.mxu1 %v4054_v1 }
0x14f8   :  { %4057 = vmatpush3.bf16.msra.mxu1 %v4054_v1 }
0x14f9   :  { %v4361_v4 = vpop.eup %4360  ;;  %4060 = vmatprep.subr.msk.bf16.mxu1 %vm4646_vm5, %v4058_v2 }
0x14fa   :  { %v1870_v5 = vmul.f32 %v4361_v4, %v4357_v58 }
0x14fc   :  { %3721 = vmatprep.mubr.msk.f32.mxu1 %vm445_vm6, %v1870_v5 }
0x14fd   :  { %3722 = vmatmul.mubr.msk.f32.vlgmr.msra.gmra.mrb[12].mxu1 %vm445_vm6, %v1871_v6 }
0x14fe   :  { %3728 = vmatprep.mubr.msk.f32.mxu1 %vm361_vm4, %v1962_v7 }
0x1501   :  { %4063 = vmatpush3.bf16.xpose.msk.msra.mxu1 %vm4646_vm5, %v4058_v2 }
0x1508   :  { %3729 = vmatmul.mubr.msk.f32.vlgmr.msra.gmra.mrb[14].mxu1 %vm361_vm4, %v1964_v8 }
0x15d0   :  { %v3723_v50 = vpop.f32.mrb[12].mxu1 }
0x15d1   :  { %1960 = vst.msk [vmem:[#allocation2 + $0x8] sm:$0xff] %vm361_vm4, %v3723_v50  ;;  %v1950_v10 = vpop.f32.mrb[13].mxu1 }
0x15d2   :  { %1959 = vst.msk [vmem:[#allocation2] sm:$0xff] %vm361_vm4, %v1950_v10 }
0x15db   :  { %v3730_v11 = vpop.f32.mrb[14].mxu1 }
0x15dc   :  { %v2049_v13 = vadd.f32 %v5034_v12, %v3730_v11  ;;  %v2043_v14 = vpop.f32.mrb[15].mxu1 }
0x15dd   :  { %v2044_v16 = vadd.f32 %v5040_v49, %v2043_v14 }
0x15de   :  { %v2055_v17 = vsel %vm445_vm6, %v2049_v13, -inf }
0x15df   :  { %2056 = vmax.xlane.f32.xlu0 %v2055_v17  ;;  %v2052_v18 = vsel %vm445_vm6, %v2044_v16, -inf }
0x15e0   :  { %2053 = vmax.xlane.f32.xlu1 %v2052_v18 }
0x15f1   :  { %4274 = vrot.lane.b32.xlu1 %v4997_v46, %s4409_s27 }
0x15f5   :  { %2171 = vrot.lane.b32.xlu1 %v4991_v24, %s4411_s29 }
0x15f9   :  { %2173 = vrot.lane.b32.xlu1 %v4989_v44, %s4411_s29 }
0x166c   :  { %v2057_v19 = vpop.xlane.xlu0 %2056 }
0x166d   :  { %v2059_v20 = vsub.f32 %v2049_v13, %v2057_v19  ;;  %v2054_v23 = vpop.xlane.xlu1 %2053 }
0x166e   :  { %v2058_v30 = vsub.f32 %v2044_v16, %v2054_v23 }
0x166f   :  { %v2062_v48 = vmul.f32 1.442695, %v2059_v20 }
0x1670   :  { %v2060_v51 = vmul.f32 1.442695, %v2058_v30 }
0x1671   :  { %4362 = vpow2.f32 %v2062_v48  ;;  %v4275_v25 = vpop.permute.xlu1 %4274 }
0x1672   :  { %v4277_v26 = vunpack.i.h.bf16 %v4275_v25  ;;  %v4276_v27 = vunpack.i.l.bf16 %v4275_v25  ;;  %4364 = vpow2.f32 %v2060_v51 }
0x1674   :  { %v4064_v28 = vpack.c.bf16 %v4277_v26, %v4276_v27 }
0x1675   :  { %v2172_v56 = vpop.permute.xlu1 %2171 }
0x1676   :  { %4065 = vmatprep.subr.bf16.mxu0 %v4064_v28 }
0x1677   :  { %4067 = vmatpush3.bf16.msra.mxu0 %v4064_v28 }
0x1679   :  { %v2174_v53 = vpop.permute.xlu1 %2173 }
0x167b   :  { %v4363_v29 = vpop.eup %4362 }
0x167c   :  { %v2067_v31 = vsel %vm445_vm6, %v4363_v29, 0.0  ;;  %v4365_v34 = vpop.eup %4364 }
0x167d   :  { %2068 = vadd.xlane.f32.xlu0 %v2067_v31  ;;  %v2064_v35 = vsel %vm445_vm6, %v4365_v34, 0.0 }
0x1681   :  { %2065 = vadd.xlane.f32.xlu0 %v2064_v35 }
0x1697   :  { %4279 = vrot.lane.b32.xlu0 %v4997_v46, %s4413_s10 }
0x170a   :  { %v2069_v36 = vpop.xlane.xlu0 %2068 }
0x170b   :  { %4366 = vrcp.f32 %v2069_v36 }
0x170e   :  { %v2066_v38 = vpop.xlane.xlu0 %2065 }
0x170f   :  { %4368 = vrcp.f32 %v2066_v38 }
0x1712   :  { %v4280_v39 = vpop.permute.xlu0 %4279 }
0x1713   :  { %v4282_v40 = vunpack.i.h.bf16 %v4280_v39  ;;  %v4281_v43 = vunpack.i.l.bf16 %v4280_v39 }
0x1715   :  { %v4068_v45 = vpack.c.bf16 %v4282_v40, %v4281_v43  ;;  %v4367_v52 = vpop.eup %4366 }
0x1716   :  { %v2073_v54 = vmul.f32 %v4367_v52, %v4363_v29 }
0x1717   :  { %4070 = vmatprep.subr.msk.bf16.mxu0 %vm4646_vm5, %v4068_v45 }
0x1719   :  { %v4369_v58 = vpop.eup %4368 }
0x171a   :  { %v2072_v61 = vmul.f32 %v4369_v58, %v4365_v34 }
0x171c   :  { %3735 = vmatprep.mubr.msk.f32.mxu0 %vm445_vm6, %v2072_v61 }
0x171d   :  { %3736 = vmatmul.mubr.msk.f32.vlgmr.msra.gmra.mrb[20].mxu0 %vm445_vm6, %v2073_v54 }
0x171e   :  { %4073 = vmatpush3.bf16.xpose.msk.msra.mxu0 %vm4646_vm5, %v4068_v45  ;;  %3742 = vmatprep.mubr.msk.f32.mxu0 %vm361_vm4, %v2172_v56 }
0x1725   :  { %3743 = vmatmul.mubr.msk.f32.vlgmr.msra.gmra.mrb[22].mxu0 %vm361_vm4, %v2174_v53 }
0x17f0   :  { %v5063_v57 = vpop.f32.mrb[20].mxu0 }
0x17f1   :  { %v5065_v60 = vpop.f32.mrb[21].mxu0 }
0x17f8   :  { %v3744_v62 = vpop.f32.mrb[22].mxu0 }
0x17f9   :  { %v2259_v63 = vadd.f32 %v5034_v12, %v3744_v62  ;;  %v2253_v47 = vpop.f32.mrb[23].mxu0 }
0x17fa   :  { %v2254_v1 = vadd.f32 %v5040_v49, %v2253_v47 }
0x17fb   :  { %v2265_v2 = vsel %vm445_vm6, %v2259_v63, -inf }
0x17fc   :  { %2266 = vmax.xlane.f32.xlu0 %v2265_v2  ;;  %v2262_v3 = vsel %vm445_vm6, %v2254_v1, -inf }
0x17fd   :  { %2263 = vmax.xlane.f32.xlu1 %v2262_v3 }
0x180e   :  { %4284 = vrot.lane.b32.xlu1 %v4997_v46, %s4415_s12 }
0x1812   :  { %2381 = vrot.lane.b32.xlu1 %v4991_v24, %s4412_s30 }
0x1816   :  { %2383 = vrot.lane.b32.xlu1 %v4989_v44, %s4412_s30 }
0x1889   :  { %v2267_v4 = vpop.xlane.xlu0 %2266 }
0x188a   :  { %v2269_v5 = vsub.f32 %v2259_v63, %v2267_v4  ;;  %v2264_v6 = vpop.xlane.xlu1 %2263 }
0x188b   :  { %v2268_v7 = vsub.f32 %v2254_v1, %v2264_v6 }
0x188c   :  { %v2272_v8 = vmul.f32 1.442695, %v2269_v5 }
0x188d   :  { %v2270_v50 = vmul.f32 1.442695, %v2268_v7 }
0x188e   :  { %4370 = vpow2.f32 %v2272_v8  ;;  %v4285_v10 = vpop.permute.xlu1 %4284 }
0x188f   :  { %v4287_v11 = vunpack.i.h.bf16 %v4285_v10  ;;  %v4286_v13 = vunpack.i.l.bf16 %v4285_v10  ;;  %4372 = vpow2.f32 %v2270_v50  ;;  %v3306_v10 = vld [vmem:[%s5361_s5 + $0x28] sm:$0xff] }
0x1891   :  { %v4074_v14 = vpack.c.bf16 %v4287_v11, %v4286_v13  ;;  %v3307_v13 = vld [vmem:[%s5361_s5 + $0x30] sm:$0xff] }
0x1892   :  { %v2382_v28 = vpop.permute.xlu1 %2381 }
0x1893   :  { %4075 = vmatprep.subr.bf16.mxu1 %v4074_v14 }
0x1894   :  { %4077 = vmatpush3.bf16.msra.mxu1 %v4074_v14  ;;  %v3308_v14 = vld [vmem:[%s5361_s5 + $0x38] sm:$0xff] }
0x1896   :  { %v2384_v29 = vpop.permute.xlu1 %2383 }
0x1898   :  { %v4371_v16 = vpop.eup %4370 }
0x1899   :  { %v2277_v24 = vsel %vm445_vm6, %v4371_v16, 0.0  ;;  %v4373_v17 = vpop.eup %4372 }
0x189a   :  { %2278 = vadd.xlane.f32.xlu0 %v2277_v24  ;;  %v2274_v44 = vsel %vm445_vm6, %v4373_v17, 0.0 }
0x189e   :  { %2275 = vadd.xlane.f32.xlu0 %v2274_v44 }
0x18b4   :  { %4289 = vrot.lane.b32.xlu0 %v4997_v46, %s4410_s28 }
0x1927   :  { %v2279_v18 = vpop.xlane.xlu0 %2278 }
0x1928   :  { %4374 = vrcp.f32 %v2279_v18 }
0x192b   :  { %v2276_v19 = vpop.xlane.xlu0 %2275 }
0x192c   :  { %4376 = vrcp.f32 %v2276_v19 }
0x192f   :  { %v4290_v20 = vpop.permute.xlu0 %4289 }
0x1930   :  { %v4292_v23 = vunpack.i.h.bf16 %v4290_v20  ;;  %v4291_v30 = vunpack.i.l.bf16 %v4290_v20 }
0x1932   :  { %v4078_v48 = vpack.c.bf16 %v4292_v23, %v4291_v30  ;;  %v4375_v51 = vpop.eup %4374  ;;  %v2696_v23 = vrot.slane %v4979_v9, %v4773_v37 }
0x1933   :  { %v2283_v27 = vmul.f32 %v4375_v51, %v4371_v16  ;;  %v4094_v16 = vpack.c.bf16 %v3308_v14, %v3307_v13 }
0x1934   :  { %4080 = vmatprep.subr.msk.bf16.mxu1 %vm4646_vm5, %v4078_v48 }
0x1936   :  { %v4377_v25 = vpop.eup %4376 }
0x1937   :  { %v2282_v26 = vmul.f32 %v4377_v25, %v4373_v17 }
0x1939   :  { %3749 = vmatprep.mubr.msk.f32.mxu1 %vm445_vm6, %v2282_v26 }
0x193a   :  { %3750 = vmatmul.mubr.msk.f32.vlgmr.msra.gmra.mrb[16].mxu1 %vm445_vm6, %v2283_v27 }
0x193b   :  { %4083 = vmatpush3.bf16.xpose.msk.msra.mxu1 %vm4646_vm5, %v4078_v48  ;;  %3756 = vmatprep.mubr.msk.f32.mxu1 %vm361_vm4, %v2382_v28 }
0x1942   :  { %3757 = vmatmul.mubr.msk.f32.vlgmr.msra.gmra.mrb[18].mxu1 %vm361_vm4, %v2384_v29 }
0x1a0d   :  { %v3751_v31 = vpop.f32.mrb[16].mxu1 }
0x1a0e   :  { %v2362_v34 = vpop.f32.mrb[17].mxu1 }
0x1a15   :  { %v3758_v35 = vpop.f32.mrb[18].mxu1 }
0x1a16   :  { %v2469_v36 = vadd.f32 %v5034_v12, %v3758_v35  ;;  %v2463_v38 = vpop.f32.mrb[19].mxu1  ;;  %v3318_v35 = vld [vmem:[%s5362_s6 + $0x98] sm:$0xff] }
0x1a17   :  { %v2464_v39 = vadd.f32 %v5040_v49, %v2463_v38  ;;  %v3319_v38 = vld [vmem:[%s5362_s6 + $0xa0] sm:$0xff] }
0x1a18   :  { %v2475_v40 = vsel %vm445_vm6, %v2469_v36, -inf }
0x1a19   :  { %2476 = vmax.xlane.f32.xlu0 %v2475_v40  ;;  %v2472_v43 = vsel %vm445_vm6, %v2464_v39, -inf }
0x1a1a   :  { %2473 = vmax.xlane.f32.xlu1 %v2472_v43  ;;  %v3321_v43 = vld [vmem:[%s5362_s6 + $0xb0] sm:$0xff] }
0x1a2b   :  { %4294 = vrot.lane.b32.xlu1 %v4997_v46, %s4414_s11 }
0x1a2f   :  { %2165 = vrot.lane.b32.xlu1 %v5063_v57, %s4416_s1 }
0x1a33   :  { %2373 = vrot.lane.b32.xlu1 %v2362_v34, %s4417_s23 }
0x1a37   :  { %2375 = vrot.lane.b32.xlu1 %v3751_v31, %s4417_s23  ;;  %v3315_v31 = vld [vmem:[%s5362_s6 + $0x80] sm:$0xff] }
0x1aa6   :  { %v2477_v55 = vpop.xlane.xlu0 %2476 }
0x1aa7   :  { %v2479_v12 = vsub.f32 %v2469_v36, %v2477_v55  ;;  %v2474_v45 = vpop.xlane.xlu1 %2473  ;;  %v3322_v55 = vld [vmem:[%s5362_s6 + $0xb8] sm:$0xff] }
0x1aa8   :  { %v2478_v49 = vsub.f32 %v2464_v39, %v2474_v45  ;;  %v3320_v39 = vld [vmem:[%s5362_s6 + $0xa8] sm:$0xff]  ;;  %v3323_v45 = vld [vmem:[%s5362_s6 + $0xc0] sm:$0xff] }
0x1aa9   :  { %v2482_v52 = vmul.f32 1.442695, %v2479_v12  ;;  %v4112_v40 = vpack.c.bf16 %v3320_v39, %v3319_v38  ;;  %v4118_v12 = vpack.c.bf16 %v3322_v55, %v3321_v43 }
0x1aaa   :  { %v2480_v58 = vmul.f32 1.442695, %v2478_v49  ;;  %v3324_v49 = vld [vmem:[%s5362_s6 + $0xc8] sm:$0xff] }
0x1aab   :  { %v4295_v61 = vpop.permute.xlu1 %4294 }
0x1aac   :  { %4378 = vpow2.f32 %v2480_v58  ;;  %v4297_v54 = vunpack.i.h.bf16 %v4295_v61  ;;  %v4296_v56 = vunpack.i.l.bf16 %v4295_v61 }
0x1aad   :  { %4380 = vpow2.f32 %v2482_v52  ;;  %v4124_v52 = vpack.c.bf16 %v3324_v49, %v3323_v45 }
0x1aae   :  { %v4084_v53 = vpack.c.bf16 %v4297_v54, %v4296_v56 }
0x1aaf   :  { %v2166_v46 = vpop.permute.xlu1 %2165 }
0x1ab0   :  { %2170 = vst.msk [vmem:[#allocation2 + $0x8] sm:$0xff] %vm765_vm7, %v2166_v46  ;;  %4085 = vmatprep.subr.bf16.mxu0 %v4084_v53 }
0x1ab1   :  { %4087 = vmatpush3.bf16.msra.mxu0 %v4084_v53 }
0x1ab3   :  { %v2374_v57 = vpop.permute.xlu1 %2373 }
0x1ab6   :  { %v4379_v62 = vpop.eup %4378 }
0x1ab7   :  { %v2376_v63 = vpop.permute.xlu1 %2375  ;;  %v2484_v47 = vsel %vm445_vm6, %v4379_v62, 0.0  ;;  %v4381_v1 = vpop.eup %4380 }
0x1ab8   :  { %2380 = vst.msk [vmem:[#allocation2 + $0x8] sm:$0xff] %vm976_vm8, %v2376_v63  ;;  %2485 = vadd.xlane.f32.xlu0 %v2484_v47  ;;  %v2487_v2 = vsel %vm445_vm6, %v4381_v1, 0.0 }
0x1abc   :  { %2488 = vadd.xlane.f32.xlu0 %v2487_v2  ;;  %v3326_v2 = vld [vmem:[%s5362_s6 + $0xd8] sm:$0xff] }
0x1ad2   :  { %2163 = vrot.lane.b32.xlu0 %v5065_v60, %s4416_s1  ;;  %v3305_v60 = vld [vmem:[%s5361_s5 + $0x20] sm:$0xff] }
0x1ad3   :  { %v4088_v11 = vpack.c.bf16 %v3306_v10, %v3305_v60 }
0x1ad5   :  { %4090 = vmatprep.subr.msk.bf16.mxu0 %vm4542_vm3, %v4088_v11 }
0x1b45   :  { %v2486_v3 = vpop.xlane.xlu0 %2485 }
0x1b46   :  { %4382 = vrcp.f32 %v2486_v3 }
0x1b49   :  { %v2489_v4 = vpop.xlane.xlu0 %2488 }
0x1b4a   :  { %4384 = vrcp.f32 %v2489_v4  ;;  %v3327_v4 = vld [vmem:[%s5362_s6 + $0xe0] sm:$0xff] }
0x1b4d   :  { %v2164_v5 = vpop.permute.xlu0 %2163 }
0x1b4e   :  { %2169 = vst.msk [vmem:[#allocation2] sm:$0xff] %vm765_vm7, %v2164_v5  ;;  %v3328_v5 = vld [vmem:[%s5362_s6 + $0xe8] sm:$0xff] }
0x1b4f   :  { %2379 = vst.msk [vmem:[#allocation2] sm:$0xff] %vm976_vm8, %v2374_v57 }
0x1b50   :  { %v4383_v6 = vpop.eup %4382 }
0x1b51   :  { %v2492_v7 = vmul.f32 %v4383_v6, %v4379_v62  ;;  %v4136_v6 = vpack.c.bf16 %v3328_v5, %v3327_v4  ;;  %v3033_v4 = vld [vmem:[%s5364_s8 + $0x20] sm:$0xff]  ;;  %v3034_v5 = vld [vmem:[%s5364_s8 + $0x28] sm:$0xff] }
0x1b53   :  { %3763 = vmatprep.mubr.msk.f32.mxu0 %vm445_vm6, %v2492_v7  ;;  %v3329_v7 = vld [vmem:[%s5362_s6 + $0xf0] sm:$0xff] }
0x1b54   :  { %v4385_v8 = vpop.eup %4384 }
0x1b55   :  { %v2493_v50 = vmul.f32 %v4385_v8, %v4381_v1  ;;  %v3325_v1 = vld [vmem:[%s5362_s6 + $0xd0] sm:$0xff]  ;;  %v3330_v8 = vld [vmem:[%s5362_s6 + $0xf8] sm:$0xff] }
0x1b56   :  { %v4130_v3 = vpack.c.bf16 %v3326_v2, %v3325_v1 }
0x1b57   :  { %3764 = vmatmul.mubr.msk.f32.vlgmr.msra.gmra.mrb[24].mxu0 %vm445_vm6, %v2493_v50  ;;  %v4142_v50 = vpack.c.bf16 %v3330_v8, %v3329_v7  ;;  %v3035_v7 = vld [vmem:[%s5364_s8 + $0x30] sm:$0xff]  ;;  %v3036_v8 = vld [vmem:[%s5364_s8 + $0x38] sm:$0xff] }
0x1b58   :  { %4093 = vmatpush3.bf16.xpose.msk.msra.mxu0 %vm4542_vm3, %v4088_v11 }
0x1b59   :  { %4096 = vmatprep.subr.msk.bf16.mxu0 %vm4542_vm3, %v4094_v16 }
0x1b60   :  { %4099 = vmatpush3.bf16.xpose.msk.msra.mxu0 %vm4542_vm3, %v4094_v16 }
0x1c2a   :  { %v3765_v24 = vpop.f32.mrb[24].mxu0 }
0x1c2b   :  { %2585 = vrot.lane.b32.xlu1 %v3765_v24, %s4418_s24  ;;  %v2572_v17 = vpop.f32.mrb[25].mxu0  ;;  %v2728_v24 = vrot.slane %v4979_v9, %v4872_v32 }
0x1c2c   :  { %2583 = vrot.lane.b32.xlu0 %v2572_v17, %s4418_s24 }
0x1c9d   :  { %v2586_v44 = vpop.permute.xlu1 %2585 }
0x1c9e   :  { %2590 = vst.msk [vmem:[#allocation2 + $0x8] sm:$0xff] %vm1187_vm9, %v2586_v44  ;;  %v2584_v18 = vpop.permute.xlu0 %2583 }
0x1c9f   :  { %2589 = vst.msk [vmem:[#allocation2] sm:$0xff] %vm1187_vm9, %v2584_v18  ;;  %v2734_v18 = vrot.slane %v4979_v9, %v1331_v33  ;;  %v3353_v33 = vld [vmem:[%s5363_s7 + $0x30] sm:$0xff] }
0x1ca5   :  { %v2592_v20 = vld [vmem:[#allocation2 + $0x8] sm:$0xff] }
0x1ca6   :  { %v2591_v19 = vld [vmem:[#allocation2] sm:$0xff] }
0x1ca7   :  { %3774 = vmatprep.mubr.msk.f32.mxu0 %vm143_vm2, %v2591_v19 }
0x1ca8   :  { %3775 = vmatmul.mubr.msk.f32.vlgmr.msra.gmra.mrb[26].mxu0 %vm143_vm2, %v2592_v20 }
0x1d7b   :  { %v3776_v30 = vpop.f32.mrb[26].mxu0 }
0x1d7c   :  { %v2692_v48 = vadd.f32 %v3776_v30, %v4904_v21  ;;  %v2682_v51 = vpop.f32.mrb[27].mxu0  ;;  %v3316_v21 = vld [vmem:[%s5362_s6 + $0x88] sm:$0xff] }
0x1d7d   :  { %v2691_v25 = vadd.f32 %v2682_v51, %v4906_v22  ;;  %v3317_v22 = vld [vmem:[%s5362_s6 + $0x90] sm:$0xff]  ;;  %v4100_v34 = vpack.c.bf16 %v3316_v21, %v3315_v31  ;;  %v3354_v31 = vld [vmem:[%s5363_s7 + $0x38] sm:$0xff] }
0x1d7e   :  { %v5139_v26 = vadd.f32 %v2696_v23, %v2692_v48  ;;  %v4106_v36 = vpack.c.bf16 %v3318_v35, %v3317_v22  ;;  %v4152_v21 = vpack.c.bf16 %v3354_v31, %v3353_v33  ;;  %v2757_v22 = vrot.slane %v4979_v9, %v1353_v0  ;;  %v3043_v33 = vld [vmem:[%s5364_s8 + $0x70] sm:$0xff]  ;;  %v3044_v31 = vld [vmem:[%s5364_s8 + $0x78] sm:$0xff] }
0x1d7f   :  { %v5141_v27 = vadd.f32 %v2696_v23, %v2691_v25  ;;  %4102 = vmatprep.subr.msk.bf16.mxu1 %vm4542_vm3, %v4100_v34  ;;  %v3351_v25 = vld [vmem:[%s5363_s7 + $0x20] sm:$0xff] }
0x1d80   :  { %v2702_v28 = vsel %vm143_vm2, %v5139_v26, 0.0  ;;  %4105 = vmatpush3.bf16.xpose.msk.msra.mxu1 %vm4542_vm3, %v4100_v34 }
0x1d81   :  { %2703 = vadd.xlane.f32.xlu1 %v2702_v28  ;;  %v2699_v29 = vsel %vm143_vm2, %v5141_v27, 0.0  ;;  %4108 = vmatprep.subr.msk.bf16.mxu1 %vm4542_vm3, %v4106_v36  ;;  %v3352_v28 = vld [vmem:[%s5363_s7 + $0x28] sm:$0xff] }
0x1d82   :  { %2700 = vadd.xlane.f32.xlu0 %v2699_v29  ;;  %v4148_v29 = vpack.c.bf16 %v3352_v28, %v3351_v25  ;;  %v3041_v25 = vld [vmem:[%s5364_s8 + $0x60] sm:$0xff]  ;;  %v3042_v28 = vld [vmem:[%s5364_s8 + $0x68] sm:$0xff] }
0x1d84   :  { %4149 = vmatprep.subr.bf16.mxu0 %v4148_v29 }
0x1d85   :  { %4151 = vmatpush3.bf16.xpose.msra.mxu0 %v4148_v29  ;;  %v4192_v29 = vpack.c.bf16 %v3042_v28, %v3041_v25 }
0x1d86   :  { %4153 = vmatprep.subr.bf16.mxu0 %v4152_v21 }
0x1d88   :  { %4111 = vmatpush3.bf16.xpose.msk.msra.mxu1 %vm4542_vm3, %v4106_v36 }
0x1d89   :  { %4114 = vmatprep.subr.msk.bf16.mxu1 %vm4542_vm3, %v4112_v40 }
0x1d8d   :  { %4155 = vmatpush3.bf16.xpose.msra.mxu0 %v4152_v21  ;;  %v4198_v21 = vpack.c.bf16 %v3044_v31, %v3043_v33 }
0x1d90   :  { %4117 = vmatpush3.bf16.xpose.msk.msra.mxu1 %vm4542_vm3, %v4112_v40 }
0x1d91   :  { %4120 = vmatprep.subr.msk.bf16.mxu1 %vm4542_vm3, %v4118_v12 }
0x1d98   :  { %4123 = vmatpush3.bf16.xpose.msk.msra.mxu1 %vm4542_vm3, %v4118_v12 }
0x1d99   :  { %4126 = vmatprep.subr.msk.bf16.mxu1 %vm4542_vm3, %v4124_v52 }
0x1da0   :  { %4129 = vmatpush3.bf16.xpose.msk.msra.mxu1 %vm4542_vm3, %v4124_v52 }
0x1da1   :  { %4132 = vmatprep.subr.msk.bf16.mxu1 %vm4542_vm3, %v4130_v3 }
0x1da8   :  { %4135 = vmatpush3.bf16.xpose.msk.msra.mxu1 %vm4542_vm3, %v4130_v3 }
0x1da9   :  { %4138 = vmatprep.subr.msk.bf16.mxu1 %vm4542_vm3, %v4136_v6 }
0x1db0   :  { %4141 = vmatpush3.bf16.xpose.msk.msra.mxu1 %vm4542_vm3, %v4136_v6  ;;  %v4168_v6 = vpack.c.bf16 %v3034_v5, %v3033_v4 }
0x1db1   :  { %4144 = vmatprep.subr.msk.bf16.mxu1 %vm4542_vm3, %v4142_v50 }
0x1db8   :  { %4147 = vmatpush3.bf16.xpose.msk.msra.mxu1 %vm4542_vm3, %v4142_v50  ;;  %v4174_v50 = vpack.c.bf16 %v3036_v8, %v3035_v7 }
0x1e0e   :  { %v2704_v58 = vpop.xlane.xlu1 %2703 }
0x1e0f   :  { %v2706_v61 = vmul.f32 0.03125, %v2704_v58  ;;  %v2701_v54 = vpop.xlane.xlu0 %2700 }
0x1e10   :  { %v2705_v56 = vmul.f32 0.03125, %v2701_v54 }
0x1e11   :  { %v2708_v53 = vsub.f32 %v5139_v26, %v2706_v61 }
0x1e12   :  { %v2707_v46 = vsub.f32 %v5141_v27, %v2705_v56  ;;  %v2988_v56 = vrot.slane %v4979_v9, %v1583_v15  ;;  %v3030_v15 = vld [vmem:[%s5364_s8 + $0x8] sm:$0xff]  ;;  %v3031_v9 = vld [vmem:[%s5364_s8 + $0x10] sm:$0xff] }
0x1e13   :  { %v2710_v63 = vmul.f32 %v2708_v53, %v2708_v53 }
0x1e14   :  { %v2709_v57 = vmul.f32 %v2707_v46, %v2707_v46 }
0x1e15   :  { %v2714_v47 = vsel %vm143_vm2, %v2710_v63, 0.0 }
0x1e16   :  { %v2711_v62 = vsel %vm143_vm2, %v2709_v57, 0.0 }
0x1e17   :  { %2712 = vadd.xlane.f32.xlu0 %v2711_v62 }
0x1e1b   :  { %2715 = vadd.xlane.f32.xlu0 %v2714_v47 }
0x1ea4   :  { %v2713_v60 = vpop.xlane.xlu0 %2712 }
0x1ea5   :  { %v2717_v10 = vmul.f32 0.03125, %v2713_v60  ;;  %v3037_v60 = vld [vmem:[%s5364_s8 + $0x40] sm:$0xff] }
0x1ea7   :  { %v2719_v11 = vadd.f32 1e-05, %v2717_v10  ;;  %v3038_v10 = vld [vmem:[%s5364_s8 + $0x48] sm:$0xff] }
0x1ea8   :  { %v2716_v13 = vpop.xlane.xlu0 %2715 }
0x1ea9   :  { %4386 = vrsqrt.f32 %v2719_v11  ;;  %v2718_v14 = vmul.f32 0.03125, %v2716_v13  ;;  %v4180_v11 = vpack.c.bf16 %v3038_v10, %v3037_v60  ;;  %v3039_v13 = vld [vmem:[%s5364_s8 + $0x50] sm:$0xff] }
0x1eab   :  { %v2720_v16 = vadd.f32 1e-05, %v2718_v14  ;;  %v3040_v14 = vld [vmem:[%s5364_s8 + $0x58] sm:$0xff] }
0x1ead   :  { %4388 = vrsqrt.f32 %v2720_v16  ;;  %v4186_v16 = vpack.c.bf16 %v3040_v14, %v3039_v13 }
0x1eb3   :  { %v4387_v17 = vpop.eup %4386 }
0x1eb4   :  { %v2723_v44 = vmul.f32 %v4387_v17, %v2707_v46 }
0x1eb6   :  { %v2729_v19 = vmul.f32 %v2728_v24, %v2723_v44 }
0x1eb7   :  { %v4389_v20 = vpop.eup %4388 }
0x1eb8   :  { %v2724_v23 = vmul.f32 %v4389_v20, %v2708_v53  ;;  %v2735_v30 = vadd.f32 %v2734_v18, %v2729_v19 }
0x1eba   :  { %v2730_v48 = vmul.f32 %v2728_v24, %v2724_v23  ;;  %3809 = vmatprep.mubr.msk.f32.mxu1 %vm143_vm2, %v2735_v30 }
0x1ebc   :  { %v2736_v51 = vadd.f32 %v2734_v18, %v2730_v48 }
0x1ebe   :  { %3810 = vmatmul.mubr.msk.f32.vlgmr.msra.gmra.mrb[20].mxu1 %vm143_vm2, %v2736_v51 }
0x1f91   :  { %v3811_v34 = vpop.f32.mrb[20].mxu1 }
0x1f92   :  { %v2884_v35 = vadd.f32 %v3811_v34, %v2757_v22  ;;  %v2878_v36 = vpop.f32.mrb[21].mxu1 }
0x1f93   :  { %v2879_v38 = vadd.f32 %v2878_v36, %v2757_v22 }
0x1f94   :  { %v3350_v39 = vmul.f32 -1.702, %v2884_v35 }
0x1f95   :  { %v3349_v40 = vmul.f32 -1.702, %v2879_v38 }
0x1f96   :  { %v2893_v43 = vmul.f32 1.442695, %v3350_v39 }
0x1f97   :  { %v2891_v55 = vmul.f32 1.442695, %v3349_v40  ;;  %v4404_v40 = vld [vmem:[%s5358_s2] sm:$0xff] }
0x1f98   :  { %4390 = vpow2.f32 %v2893_v43  ;;  %v3020_v43 = vrot.slane %v4404_v40, %v4622_v41  ;;  %v3026_v59 = vrot.slane %v4404_v40, %v4773_v37 }
0x1f99   :  { %4392 = vpow2.f32 %v2891_v55 }
0x1fa2   :  { %v4391_v12 = vpop.eup %4390 }
0x1fa3   :  { %v4393_v45 = vpop.eup %4392  ;;  %v2896_v49 = vadd.f32 1.0, %v4391_v12 }
0x1fa4   :  { %v2895_v52 = vadd.f32 1.0, %v4393_v45 }
0x1fa5   :  { %4394 = vrcp.f32 %v2896_v49 }
0x1fa6   :  { %4396 = vrcp.f32 %v2895_v52 }
0x1faf   :  { %v4395_v58 = vpop.eup %4394 }
0x1fb0   :  { %v4397_v61 = vpop.eup %4396  ;;  %v2902_v0 = vmul.f32 %v4395_v58, %v2884_v35 }
0x1fb1   :  { %v2901_v54 = vmul.f32 %v4397_v61, %v2879_v38 }
0x1fb3   :  { %3820 = vmatprep.mubr.f32.mxu0 %v2901_v54 }
0x1fb4   :  { %3821 = vmatmul.mubr.f32.vlgmr.msra.gmra.mrb[28].mxu0 %v2902_v0  ;;  %v3048_v0 = vrot.slane %v4404_v40, %v4872_v32 }
0x2087   :  { %v3822_v53 = vpop.f32.mrb[28].mxu0 }
0x2088   :  { %v2984_v46 = vadd.f32 %v3822_v53, %v5139_v26  ;;  %v2974_v57 = vpop.f32.mrb[29].mxu0  ;;  %v4156_v26 = vpack.c.bf16 %v3030_v15, %v3029_v42 }
0x2089   :  { %v2983_v62 = vadd.f32 %v2974_v57, %v5141_v27  ;;  %v3032_v27 = vld [vmem:[%s5364_s8 + $0x18] sm:$0xff] }
0x208a   :  { %v2990_v63 = vadd.f32 %v2988_v56, %v2984_v46  ;;  %v4162_v3 = vpack.c.bf16 %v3032_v27, %v3031_v9  ;;  %4158 = vmatprep.subr.msk.bf16.mxu0 %vm4542_vm3, %v4156_v26 }
0x208b   :  { %v2989_v47 = vadd.f32 %v2988_v56, %v2983_v62  ;;  %4161 = vmatpush3.bf16.xpose.msk.msra.mxu0 %vm4542_vm3, %v4156_v26 }
0x208c   :  { %v2994_v1 = vsel %vm143_vm2, %v2990_v63, 0.0  ;;  %4164 = vmatprep.subr.msk.bf16.mxu0 %vm4542_vm3, %v4162_v3 }
0x208d   :  { %2995 = vadd.xlane.f32.xlu1 %v2994_v1  ;;  %v2991_v2 = vsel %vm143_vm2, %v2989_v47, 0.0 }
0x208e   :  { %2992 = vadd.xlane.f32.xlu0 %v2991_v2 }
0x2093   :  { %4167 = vmatpush3.bf16.xpose.msk.msra.mxu0 %vm4542_vm3, %v4162_v3 }
0x2094   :  { %4170 = vmatprep.subr.msk.bf16.mxu0 %vm4542_vm3, %v4168_v6 }
0x209b   :  { %4173 = vmatpush3.bf16.xpose.msk.msra.mxu0 %vm4542_vm3, %v4168_v6 }
0x209c   :  { %4176 = vmatprep.subr.msk.bf16.mxu0 %vm4542_vm3, %v4174_v50 }
0x20a3   :  { %4179 = vmatpush3.bf16.xpose.msk.msra.mxu0 %vm4542_vm3, %v4174_v50 }
0x20a4   :  { %4182 = vmatprep.subr.msk.bf16.mxu0 %vm4542_vm3, %v4180_v11 }
0x20ab   :  { %4185 = vmatpush3.bf16.xpose.msk.msra.mxu0 %vm4542_vm3, %v4180_v11 }
0x20ac   :  { %4188 = vmatprep.subr.msk.bf16.mxu0 %vm4542_vm3, %v4186_v16 }
0x20b3   :  { %4191 = vmatpush3.bf16.xpose.msk.msra.mxu0 %vm4542_vm3, %v4186_v16 }
0x20b4   :  { %4194 = vmatprep.subr.msk.bf16.mxu0 %vm4542_vm3, %v4192_v29 }
0x20bb   :  { %4197 = vmatpush3.bf16.xpose.msk.msra.mxu0 %vm4542_vm3, %v4192_v29 }
0x20bc   :  { %4200 = vmatprep.subr.msk.bf16.mxu0 %vm4542_vm3, %v4198_v21 }
0x20c3   :  { %4203 = vmatpush3.bf16.xpose.msk.msra.mxu0 %vm4542_vm3, %v4198_v21 }
0x211a   :  { %v2996_v24 = vpop.xlane.xlu1 %2995 }
0x211b   :  { %v2998_v17 = vmul.f32 0.03125, %v2996_v24  ;;  %v2993_v44 = vpop.xlane.xlu0 %2992 }
0x211c   :  { %v2997_v18 = vmul.f32 0.03125, %v2993_v44 }
0x211d   :  { %v3000_v19 = vsub.f32 %v2990_v63, %v2998_v17 }
0x211e   :  { %v2999_v20 = vsub.f32 %v2989_v47, %v2997_v18 }
0x211f   :  { %v3002_v23 = vmul.f32 %v3000_v19, %v3000_v19 }
0x2120   :  { %v3001_v30 = vmul.f32 %v2999_v20, %v2999_v20 }
0x2121   :  { %v3006_v48 = vsel %vm143_vm2, %v3002_v23, 0.0 }
0x2122   :  { %3007 = vadd.xlane.f32.xlu1 %v3006_v48  ;;  %v3003_v51 = vsel %vm143_vm2, %v3001_v30, 0.0 }
0x2123   :  { %3004 = vadd.xlane.f32.xlu0 %v3003_v51 }
0x21af   :  { %v3008_v22 = vpop.xlane.xlu1 %3007 }
0x21b0   :  { %v3010_v34 = vmul.f32 0.03125, %v3008_v22  ;;  %v3005_v35 = vpop.xlane.xlu0 %3004 }
0x21b1   :  { %v3009_v36 = vmul.f32 0.03125, %v3005_v35 }
0x21b2   :  { %v3012_v38 = vadd.f32 1e-05, %v3010_v34 }
0x21b3   :  { %v3011_v39 = vadd.f32 1e-05, %v3009_v36 }
0x21b4   :  { %4398 = vrsqrt.f32 %v3012_v38 }
0x21b5   :  { %4400 = vrsqrt.f32 %v3011_v39 }
0x21be   :  { %v4399_v55 = vpop.eup %4398 }
0x21bf   :  { %v4401_v12 = vpop.eup %4400  ;;  %v3016_v45 = vmul.f32 %v4399_v55, %v3000_v19 }
0x21c0   :  { %v3015_v49 = vmul.f32 %v4401_v12, %v2999_v20 }
0x21c1   :  { %v3022_v52 = vmul.f32 %v3020_v43, %v3016_v45 }
0x21c2   :  { %v3021_v58 = vmul.f32 %v3020_v43, %v3015_v49 }
0x21c3   :  { %v3028_v54 = vadd.f32 %v3026_v59, %v3022_v52 }
0x21c4   :  { %v3027_v61 = vadd.f32 %v3026_v59, %v3021_v58 }
0x21c6   :  { %3855 = vmatprep.mubr.msk.f32.mxu0 %vm143_vm2, %v3027_v61 }
0x21c7   :  { %3856 = vmatmul.mubr.msk.f32.vlgmr.msra.gmra.mrb[30].mxu0 %vm143_vm2, %v3028_v54 }
0x229a   :  { %v3857_v56 = vpop.f32.mrb[30].mxu0 }
0x229b   :  { %v3175_v53 = vadd.f32 %v3857_v56, %v3048_v0  ;;  %v3169_v46 = vpop.f32.mrb[31].mxu0 }
0x229c   :  { %v3170_v41 = vadd.f32 %v3169_v46, %v3048_v0 }
0x229d   :  { %3179 = vst [vmem:[%s5365_s9 + $0x8] sm:$0xff] %v3175_v53 }
0x229e   :  { %3178 = vst [vmem:[%s5365_s9] sm:$0xff] %v3170_v41 }

</bundles_post_ra>
